<compile_context>
chip_gen: v7x
topology: tpu7x:2x2x1
jax: 0.10.0
libtpu: 0.0.40
codegen_flags: <defaults>
</compile_context>

<pallas_src>
import functools
import math

import jax
import jax.numpy as jnp
import numpy as np
from jax.experimental import pallas as pl
from jax.experimental.pallas import tpu as pltpu

NUM_HEADS = 8
SCALES = (1, 2, 4, 8)


# ----------------------------------------------------------------------------
# Static helper tables (trace-time numpy; tiny)
# ----------------------------------------------------------------------------
def _adaptive_pool_weights(T, scales):
    """W[s, t] such that mean_i(adaptive_avg_pool1d bin_i) == W[s] @ x[:, t]."""
    W = np.zeros((len(scales), T), np.float64)
    for si, s in enumerate(scales):
        for i in range(s):
            lo = (i * T) // s
            hi = -((-(i + 1) * T) // s)  # ceil((i+1)*T/s), torch's bin formula
            W[si, lo:hi] += 1.0 / (hi - lo)
        W[si] /= s
    return W.astype(np.float32)


def _head_map(D, H):
    dk = D // H
    return (np.arange(D)[:, None] // dk == np.arange(H)[None, :]).astype(np.float32)


def _erf(x):
    """Exact-GELU erf via Abramowitz & Stegun 7.1.26 (|err| < 2e-7).

    Uses only exp/elementary ops so it always lowers on the TPU VPU/EUP.
    """
    a1, a2, a3, a4, a5 = 0.254829592, -0.284496736, 1.421413741, -1.453152027, 1.061405429
    p = 0.3275911
    sgn = jnp.where(x >= 0.0, 1.0, -1.0)
    ax = jnp.abs(x)
    t = 1.0 / (1.0 + p * ax)
    poly = ((((a5 * t + a4) * t + a3) * t + a2) * t + a1) * t
    return sgn * (1.0 - poly * jnp.exp(-ax * ax))


# ----------------------------------------------------------------------------
# The single fused Pallas kernel (one grid step == one batch row)
# ----------------------------------------------------------------------------
def _msp_kernel(x_ref, m_ref, pq_ref, wq_ref, bq_ref, wkv_ref, bkv_ref,
                wo_ref, bo_ref, hmap_ref, hmapt_ref, wms_ref,
                w1_ref, b1_ref, rmsw_ref, w2_ref, b2_ref, o_ref, *, eps):
    f32 = jnp.float32
    bf16 = jnp.bfloat16

    x = x_ref[...]                      # (T, D)
    m = m_ref[...]                      # (T, 1)  1.0 = valid, 0.0 = padded
    D = x.shape[-1]
    H = hmap_ref.shape[1]
    dk = D // H

    # ---- masked mean / max pooling over time --------------------------------
    masked_x = x * m
    denom = jnp.maximum(jnp.sum(m, axis=0, keepdims=True), 1e-9)       # (1, 1)
    mean_pooled = jnp.sum(masked_x, axis=0, keepdims=True) / denom     # (1, D)

    neg_inf = jnp.float32(-jnp.inf)
    x_for_max = jnp.where(m > 0.0, x, neg_inf)
    max_pooled = jnp.max(x_for_max, axis=0, keepdims=True)             # (1, D)
    max_pooled = jnp.where(jnp.isinf(max_pooled), 0.0, max_pooled)

    # ---- 4 adaptive-avg-pool scales as one small matmul ---------------------
    ms = jnp.dot(wms_ref[...].astype(bf16), masked_x.astype(bf16),
                 preferred_element_type=f32)                           # (4, D)

    # ---- single-query multi-head attention pooling --------------------------
    q = jnp.dot(pq_ref[...].astype(bf16), wq_ref[...].astype(bf16),
                preferred_element_type=f32) + bq_ref[...]              # (1, D)
    q = q * (dk ** -0.5)
    kv = jnp.dot(x.astype(bf16), wkv_ref[...].astype(bf16),
                 preferred_element_type=f32) + bkv_ref[...]            # (T, 2D)
    k = kv[:, :D]
    v = kv[:, D:]

    # per-head dot products via the 0/1 head map (no reshape/transpose)
    scores = jnp.dot((k * q).astype(bf16), hmap_ref[...].astype(bf16),
                     preferred_element_type=f32)                       # (T, H)
    scores = jnp.where(m > 0.0, scores, jnp.float32(-1e30))            # key padding
    smax = jnp.max(scores, axis=0, keepdims=True)
    p = jnp.exp(scores - smax)
    attnw = p / jnp.sum(p, axis=0, keepdims=True)                      # (T, H)
    attn_full = jnp.dot(attnw.astype(bf16), hmapt_ref[...].astype(bf16),
                        preferred_element_type=f32)                    # (T, D)
    ctx = jnp.sum(attn_full * v, axis=0, keepdims=True)                # (1, D)
    attended = jnp.dot(ctx.astype(bf16), wo_ref[...].astype(bf16),
                       preferred_element_type=f32) + bo_ref[...]       # (1, D)

    # ---- combiner: Linear(7D, 2D) computed group-wise (no in-kernel concat) -
    w1 = w1_ref[...]                                                   # (7D, 2D)

    def group_mm(feat, g):
        wg = w1[g * D:(g + 1) * D, :]
        return jnp.dot(feat.astype(bf16), wg.astype(bf16),
                       preferred_element_type=f32)

    h = group_mm(mean_pooled, 0) + group_mm(max_pooled, 1) + group_mm(attended, 2)
    for s_idx in range(wms_ref.shape[0]):
        h = h + group_mm(ms[s_idx:s_idx + 1, :], 3 + s_idx)
    h = h + b1_ref[...]                                                # (1, 2D)

    # RMSNorm (eps outside the sqrt, like the reference module)
    norm = jnp.sqrt(jnp.sum(h * h, axis=-1, keepdims=True)) * (h.shape[-1] ** -0.5)
    hn = h / (norm + eps) * rmsw_ref[...]

    # exact GELU (erf form), Dropout = identity, final Linear(2D, D)
    g = 0.5 * hn * (1.0 + _erf(hn * (2.0 ** -0.5)))
    out = jnp.dot(g.astype(bf16), w2_ref[...].astype(bf16),
                  preferred_element_type=f32) + b2_ref[...]            # (1, D)
    o_ref[...] = out


# ----------------------------------------------------------------------------
# Wrapper
# ----------------------------------------------------------------------------
def multi_scale_pooling(params, x, attention_mask, pooling_query):
    """x: (B, T, D); attention_mask: (B, T) in {0,1}; pooling_query: (1, 1, D)."""
    B, T, D = x.shape
    H = NUM_HEADS
    assert D % H == 0

    wms = jnp.asarray(_adaptive_pool_weights(T, SCALES))   # (4, T)
    hmap = jnp.asarray(_head_map(D, H))                    # (D, H)
    mask_e = attention_mask.astype(jnp.float32).reshape(B, T, 1)

    def full2d(r, c):
        return pl.BlockSpec((r, c), lambda b: (0, 0))

    out = pl.pallas_call(
        functools.partial(_msp_kernel, eps=1e-6),
        out_shape=jax.ShapeDtypeStruct((B, 1, D), jnp.float32),
        grid=(B,),
        in_specs=[
            pl.BlockSpec((None, T, D), lambda b: (b, 0, 0)),   # x (one batch row)
            pl.BlockSpec((None, T, 1), lambda b: (b, 0, 0)),   # mask
            full2d(1, D),                                      # pooling query
            full2d(D, D), full2d(1, D),                        # wq, bq
            full2d(D, 2 * D), full2d(1, 2 * D),                # fused wkv, bkv
            full2d(D, D), full2d(1, D),                        # wo, bo
            full2d(D, H), full2d(H, D),                        # head map, head map^T
            full2d(len(SCALES), T),                            # adaptive-pool weights
            full2d(7 * D, 2 * D), full2d(1, 2 * D),            # combiner w1, b1
            full2d(1, 2 * D),                                  # RMSNorm weight
            full2d(2 * D, D), full2d(1, D),                    # combiner w2, b2
        ],
        out_specs=pl.BlockSpec((None, 1, D), lambda b: (b, 0, 0)),
        compiler_params=pltpu.CompilerParams(
            dimension_semantics=("parallel",)),                # v7x: 2 TCs, 1 row each
    )(x.astype(jnp.float32), mask_e,
      pooling_query.reshape(1, D).astype(jnp.float32),
      params["wq"], params["bq"], params["wkv"], params["bkv"],
      params["wo"], params["bo"], hmap, hmap.T, wms,
      params["w1"], params["b1"], params["rms_w"], params["w2"], params["b2"])
    return out.reshape(B, D)


# ----------------------------------------------------------------------------
# Deterministic parameter init (shapes follow the module's __init__)
# ----------------------------------------------------------------------------
def init_params(key, d_model):
    D = d_model
    keys = iter(jax.random.split(key, 16))
    nk = lambda: next(keys)

    def lin(i, o):
        w = jax.random.normal(nk(), (i, o), jnp.float32) / np.sqrt(i)
        b = jax.random.normal(nk(), (1, o), jnp.float32) * 0.02
        return w, b

    wq, bq = lin(D, D)
    wk, bk = lin(D, D)
    wv, bv = lin(D, D)
    wo, bo = lin(D, D)
    w1, b1 = lin(7 * D, 2 * D)
    w2, b2 = lin(2 * D, D)
    return dict(
        wq=wq, bq=bq,
        wkv=jnp.concatenate([wk, wv], axis=1),     # fused K/V projection weight
        bkv=jnp.concatenate([bk, bv], axis=1),
        wo=wo, bo=bo,
        w1=w1, b1=b1,
        rms_w=jnp.ones((1, 2 * D), jnp.float32),
        w2=w2, b2=b2,
    )


# ----------------------------------------------------------------------------
# Pure-JAX reference (mirrors the PyTorch forward) for validation
# ----------------------------------------------------------------------------
def ref_forward(params, x, attention_mask, pooling_query):
    hp = jax.lax.Precision.HIGHEST
    B, T, D = x.shape
    H = NUM_HEADS
    dk = D // H
    mask = attention_mask.astype(jnp.float32)
    em = mask[:, :, None]

    masked_x = x * em
    mean_pooled = masked_x.sum(1) / jnp.maximum(em.sum(1), 1e-9)
    x_for_max = jnp.where(em == 0, -jnp.inf, x)
    max_pooled = x_for_max.max(1)
    max_pooled = jnp.where(jnp.isinf(max_pooled), 0.0, max_pooled)

    xt = jnp.swapaxes(masked_x, 1, 2)                      # (B, D, T)
    ms_feats = []
    for s in SCALES:
        bins = []
        for i in range(s):
            lo = (i * T) // s
            hi = -((-(i + 1) * T) // s)
            bins.append(xt[:, :, lo:hi].mean(-1))
        ms_feats.append(jnp.stack(bins, -1).mean(-1))      # (B, D)

    wkv, bkv = params["wkv"], params["bkv"]
    wk, wv = wkv[:, :D], wkv[:, D:]
    bk, bv = bkv[:, :D], bkv[:, D:]
    query = jnp.broadcast_to(pooling_query.reshape(1, 1, D), (B, 1, D))
    q = jnp.einsum("bqd,de->bqe", query, params["wq"], precision=hp) + params["bq"]
    k = jnp.einsum("btd,de->bte", x, wk, precision=hp) + bk
    v = jnp.einsum("btd,de->bte", x, wv, precision=hp) + bv
    qh = q.reshape(B, 1, H, dk).transpose(0, 2, 1, 3)
    kh = k.reshape(B, T, H, dk).transpose(0, 2, 1, 3)
    vh = v.reshape(B, T, H, dk).transpose(0, 2, 1, 3)
    scores = jnp.einsum("bhqd,bhkd->bhqk", qh, kh, precision=hp) / math.sqrt(dk)
    scores = jnp.where(mask[:, None, None, :] > 0, scores, -1e30)
    a = jax.nn.softmax(scores, axis=-1)
    ctx = jnp.einsum("bhqk,bhkd->bhqd", a, vh, precision=hp)
    ctx = ctx.transpose(0, 2, 1, 3).reshape(B, D)
    attended = jnp.matmul(ctx, params["wo"], precision=hp) + params["bo"]

    feats = jnp.concatenate([mean_pooled, max_pooled, attended] + ms_feats, axis=-1)
    h = jnp.matmul(feats, params["w1"], precision=hp) + params["b1"]
    norm = jnp.sqrt(jnp.sum(h * h, -1, keepdims=True)) * (h.shape[-1] ** -0.5)
    hn = h / (norm + 1e-6) * params["rms_w"]
    g = 0.5 * hn * (1.0 + jax.lax.erf(hn / jnp.sqrt(2.0)))
    return jnp.matmul(g, params["w2"], precision=hp) + params["b2"]


# ----------------------------------------------------------------------------
if __name__ == "__main__":
    key = jax.random.PRNGKey(0)
    B, T, D = 2, 12, 32
    kx, kq, kp = jax.random.split(key, 3)
    params = init_params(kp, D)

    x = jax.random.normal(kx, (B, T, D), jnp.float32)
    attention_mask = jnp.ones((B, T), jnp.float32)
    attention_mask = attention_mask.at[0, 9:].set(0.0)   # padded tail
    attention_mask = attention_mask.at[1, 5:7].set(0.0)  # padded middle
    # torch draws this with torch.randn at every forward; here it is a
    # deterministic input so kernel and reference see the same query.
    pooling_query = jax.random.normal(kq, (1, 1, D), jnp.float32) * 0.02

    fwd = jax.jit(multi_scale_pooling)
    out = jax.block_until_ready(fwd(params, x, attention_mask, pooling_query))

    ref = ref_forward(params, x, attention_mask, pooling_query)
    np.testing.assert_allclose(np.asarray(out), np.asarray(ref), rtol=2e-2, atol=2e-2)
    assert out.shape == (B, D)
    print("KERNEL_OK")
</pallas_src>

<mosaic_0001>
module attributes {stable_mosaic.version = 11 : i64} {
  func.func @_msp_kernel(%arg0: i32, %arg1: memref<1x12x32xf32, #tpu.memory_space<vmem>>, %arg2: memref<1x12x1xf32, #tpu.memory_space<vmem>>, %arg3: memref<1x32xf32, #tpu.memory_space<vmem>>, %arg4: memref<32x32xf32, #tpu.memory_space<vmem>>, %arg5: memref<1x32xf32, #tpu.memory_space<vmem>>, %arg6: memref<32x64xf32, #tpu.memory_space<vmem>>, %arg7: memref<1x64xf32, #tpu.memory_space<vmem>>, %arg8: memref<32x32xf32, #tpu.memory_space<vmem>>, %arg9: memref<1x32xf32, #tpu.memory_space<vmem>>, %arg10: memref<32x8xf32, #tpu.memory_space<vmem>>, %arg11: memref<8x32xf32, #tpu.memory_space<vmem>>, %arg12: memref<4x12xf32, #tpu.memory_space<vmem>>, %arg13: memref<224x64xf32, #tpu.memory_space<vmem>>, %arg14: memref<1x64xf32, #tpu.memory_space<vmem>>, %arg15: memref<1x64xf32, #tpu.memory_space<vmem>>, %arg16: memref<64x32xf32, #tpu.memory_space<vmem>>, %arg17: memref<1x32xf32, #tpu.memory_space<vmem>>, %arg18: memref<1x1x32xf32, #tpu.memory_space<vmem>>) attributes {dimension_semantics = [#tpu.dimension_semantics<parallel>], iteration_bounds = array<i64: 2>, scalar_prefetch = 0 : i64, scratch_operands = 0 : i64, tpu.core_type = #tpu.core_type<tc>, window_params = [{transform_indices = @transform_0, window_bounds = array<i64: 1, 12, 32>}, {transform_indices = @transform_1, window_bounds = array<i64: 1, 12, 1>}, {pipeline_mode = #tpu.pipeline_mode<synchronous>, transform_indices = @transform_2, window_bounds = array<i64: 1, 32>}, {pipeline_mode = #tpu.pipeline_mode<synchronous>, transform_indices = @transform_3, window_bounds = array<i64: 32, 32>}, {pipeline_mode = #tpu.pipeline_mode<synchronous>, transform_indices = @transform_4, window_bounds = array<i64: 1, 32>}, {pipeline_mode = #tpu.pipeline_mode<synchronous>, transform_indices = @transform_5, window_bounds = array<i64: 32, 64>}, {pipeline_mode = #tpu.pipeline_mode<synchronous>, transform_indices = @transform_6, window_bounds = array<i64: 1, 64>}, {pipeline_mode = #tpu.pipeline_mode<synchronous>, transform_indices = @transform_7, window_bounds = array<i64: 32, 32>}, {pipeline_mode = #tpu.pipeline_mode<synchronous>, transform_indices = @transform_8, window_bounds = array<i64: 1, 32>}, {pipeline_mode = #tpu.pipeline_mode<synchronous>, transform_indices = @transform_9, window_bounds = array<i64: 32, 8>}, {pipeline_mode = #tpu.pipeline_mode<synchronous>, transform_indices = @transform_10, window_bounds = array<i64: 8, 32>}, {pipeline_mode = #tpu.pipeline_mode<synchronous>, transform_indices = @transform_11, window_bounds = array<i64: 4, 12>}, {pipeline_mode = #tpu.pipeline_mode<synchronous>, transform_indices = @transform_12, window_bounds = array<i64: 224, 64>}, {pipeline_mode = #tpu.pipeline_mode<synchronous>, transform_indices = @transform_13, window_bounds = array<i64: 1, 64>}, {pipeline_mode = #tpu.pipeline_mode<synchronous>, transform_indices = @transform_14, window_bounds = array<i64: 1, 64>}, {pipeline_mode = #tpu.pipeline_mode<synchronous>, transform_indices = @transform_15, window_bounds = array<i64: 64, 32>}, {pipeline_mode = #tpu.pipeline_mode<synchronous>, transform_indices = @transform_16, window_bounds = array<i64: 1, 32>}, {transform_indices = @transform_17, window_bounds = array<i64: 1, 1, 32>}]} {
    %c0 = arith.constant 0 : index
    %c0_0 = arith.constant 0 : index
    %c0_1 = arith.constant 0 : index
    %0 = vector.load %arg1[%c0, %c0_0, %c0_1] : memref<1x12x32xf32, #tpu.memory_space<vmem>>, vector<1x12x32xf32>
    %1 = vector.shape_cast %0 : vector<1x12x32xf32> to vector<12x32xf32>
    %c0_2 = arith.constant 0 : index
    %c0_3 = arith.constant 0 : index
    %c0_4 = arith.constant 0 : index
    %2 = vector.load %arg2[%c0_2, %c0_3, %c0_4] : memref<1x12x1xf32, #tpu.memory_space<vmem>>, vector<1x12x1xf32>
    %3 = vector.shape_cast %2 : vector<1x12x1xf32> to vector<12x1xf32>
    %4 = vector.broadcast %3 : vector<12x1xf32> to vector<12x32xf32>
    %5 = arith.mulf %1, %4 : vector<12x32xf32>
    %cst = arith.constant dense<0.000000e+00> : vector<1xf32>
    %6 = vector.multi_reduction <add>, %3, %cst [0] : vector<12x1xf32> to vector<1xf32>
    %7 = vector.shape_cast %6 : vector<1xf32> to vector<1x1xf32>
    %cst_5 = arith.constant 9.99999971E-10 : f32
    %8 = vector.broadcast %cst_5 : f32 to vector<1x1xf32>
    %9 = arith.maximumf %7, %8 : vector<1x1xf32>
    %cst_6 = arith.constant dense<0.000000e+00> : vector<32xf32>
    %10 = vector.multi_reduction <add>, %5, %cst_6 [0] : vector<12x32xf32> to vector<32xf32>
    %11 = vector.shape_cast %10 : vector<32xf32> to vector<1x32xf32>
    %12 = vector.broadcast %9 : vector<1x1xf32> to vector<1x32xf32>
    %13 = arith.divf %11, %12 : vector<1x32xf32>
    %cst_7 = arith.constant 0.000000e+00 : f32
    %14 = vector.broadcast %cst_7 : f32 to vector<12x1xf32>
    %15 = arith.cmpf ogt, %3, %14 : vector<12x1xf32>
    %cst_8 = arith.constant 0xFF800000 : f32
    %16 = vector.shape_cast %15 : vector<12x1xi1> to vector<12x1xi1>
    %17 = vector.broadcast %16 : vector<12x1xi1> to vector<12x32xi1>
    %18 = vector.broadcast %cst_8 : f32 to vector<12x32xf32>
    %19 = arith.select %17, %1, %18 : vector<12x32xi1>, vector<12x32xf32>
    %cst_9 = arith.constant dense<0xFF800000> : vector<32xf32>
    %20 = vector.multi_reduction <maximumf>, %19, %cst_9 [0] : vector<12x32xf32> to vector<32xf32>
    %21 = vector.shape_cast %20 : vector<32xf32> to vector<1x32xf32>
    %22 = math.absf %21 : vector<1x32xf32>
    %cst_10 = arith.constant 0x7F800000 : f32
    %23 = vector.broadcast %cst_10 : f32 to vector<1x32xf32>
    %24 = arith.cmpf oeq, %22, %23 : vector<1x32xf32>
    %cst_11 = arith.constant 0.000000e+00 : f32
    %25 = vector.broadcast %cst_11 : f32 to vector<1x32xf32>
    %26 = arith.select %24, %25, %21 : vector<1x32xi1>, vector<1x32xf32>
    %c0_12 = arith.constant 0 : index
    %c0_13 = arith.constant 0 : index
    %27 = vector.load %arg12[%c0_12, %c0_13] : memref<4x12xf32, #tpu.memory_space<vmem>>, vector<4x12xf32>
    %28 = arith.truncf %27 : vector<4x12xf32> to vector<4x12xbf16>
    %29 = arith.truncf %5 : vector<12x32xf32> to vector<12x32xbf16>
    %cst_14 = arith.constant dense<0.000000e+00> : vector<4x32xf32>
    %30 = tpu.matmul %28, %29, %cst_14 {dimension_numbers = #tpu.dot_dimension_numbers<[1], [0], [0], [1], [0, 0, 1, 1], [], []>} : vector<4x12xbf16>, vector<12x32xbf16>, vector<4x32xf32> -> vector<4x32xf32>
    %c0_15 = arith.constant 0 : index
    %c0_16 = arith.constant 0 : index
    %31 = vector.load %arg3[%c0_15, %c0_16] : memref<1x32xf32, #tpu.memory_space<vmem>>, vector<1x32xf32>
    %32 = arith.truncf %31 : vector<1x32xf32> to vector<1x32xbf16>
    %c0_17 = arith.constant 0 : index
    %c0_18 = arith.constant 0 : index
    %33 = vector.load %arg4[%c0_17, %c0_18] : memref<32x32xf32, #tpu.memory_space<vmem>>, vector<32x32xf32>
    %34 = arith.truncf %33 : vector<32x32xf32> to vector<32x32xbf16>
    %cst_19 = arith.constant dense<0.000000e+00> : vector<1x32xf32>
    %35 = tpu.matmul %32, %34, %cst_19 {dimension_numbers = #tpu.dot_dimension_numbers<[1], [0], [0], [1], [0, 0, 1, 1], [], []>} : vector<1x32xbf16>, vector<32x32xbf16>, vector<1x32xf32> -> vector<1x32xf32>
    %c0_20 = arith.constant 0 : index
    %c0_21 = arith.constant 0 : index
    %36 = vector.load %arg5[%c0_20, %c0_21] : memref<1x32xf32, #tpu.memory_space<vmem>>, vector<1x32xf32>
    %37 = arith.addf %35, %36 : vector<1x32xf32>
    %cst_22 = arith.constant 5.000000e-01 : f32
    %38 = vector.broadcast %cst_22 : f32 to vector<1x32xf32>
    %39 = arith.mulf %37, %38 : vector<1x32xf32>
    %40 = arith.truncf %1 : vector<12x32xf32> to vector<12x32xbf16>
    %c0_23 = arith.constant 0 : index
    %c0_24 = arith.constant 0 : index
    %41 = vector.load %arg6[%c0_23, %c0_24] : memref<32x64xf32, #tpu.memory_space<vmem>>, vector<32x64xf32>
    %42 = arith.truncf %41 : vector<32x64xf32> to vector<32x64xbf16>
    %cst_25 = arith.constant dense<0.000000e+00> : vector<12x64xf32>
    %43 = tpu.matmul %40, %42, %cst_25 {dimension_numbers = #tpu.dot_dimension_numbers<[1], [0], [0], [1], [0, 0, 1, 1], [], []>} : vector<12x32xbf16>, vector<32x64xbf16>, vector<12x64xf32> -> vector<12x64xf32>
    %c0_26 = arith.constant 0 : index
    %c0_27 = arith.constant 0 : index
    %44 = vector.load %arg7[%c0_26, %c0_27] : memref<1x64xf32, #tpu.memory_space<vmem>>, vector<1x64xf32>
    %45 = vector.broadcast %44 : vector<1x64xf32> to vector<12x64xf32>
    %46 = arith.addf %43, %45 : vector<12x64xf32>
    %47 = vector.extract_strided_slice %46 {offsets = [0, 0], sizes = [12, 32], strides = [1, 1]} : vector<12x64xf32> to vector<12x32xf32>
    %48 = vector.extract_strided_slice %46 {offsets = [0, 32], sizes = [12, 32], strides = [1, 1]} : vector<12x64xf32> to vector<12x32xf32>
    %49 = vector.broadcast %39 : vector<1x32xf32> to vector<12x32xf32>
    %50 = arith.mulf %47, %49 : vector<12x32xf32>
    %51 = arith.truncf %50 : vector<12x32xf32> to vector<12x32xbf16>
    %c0_28 = arith.constant 0 : index
    %c0_29 = arith.constant 0 : index
    %52 = vector.load %arg10[%c0_28, %c0_29] : memref<32x8xf32, #tpu.memory_space<vmem>>, vector<32x8xf32>
    %53 = arith.truncf %52 : vector<32x8xf32> to vector<32x8xbf16>
    %cst_30 = arith.constant dense<0.000000e+00> : vector<12x8xf32>
    %54 = tpu.matmul %51, %53, %cst_30 {dimension_numbers = #tpu.dot_dimension_numbers<[1], [0], [0], [1], [0, 0, 1, 1], [], []>} : vector<12x32xbf16>, vector<32x8xbf16>, vector<12x8xf32> -> vector<12x8xf32>
    %cst_31 = arith.constant 0.000000e+00 : f32
    %55 = vector.broadcast %cst_31 : f32 to vector<12x1xf32>
    %56 = arith.cmpf ogt, %3, %55 : vector<12x1xf32>
    %cst_32 = arith.constant -1.000000e+30 : f32
    %57 = vector.shape_cast %56 : vector<12x1xi1> to vector<12x1xi1>
    %58 = vector.broadcast %57 : vector<12x1xi1> to vector<12x8xi1>
    %59 = vector.broadcast %cst_32 : f32 to vector<12x8xf32>
    %60 = arith.select %58, %54, %59 : vector<12x8xi1>, vector<12x8xf32>
    %cst_33 = arith.constant dense<0xFF800000> : vector<8xf32>
    %61 = vector.multi_reduction <maximumf>, %60, %cst_33 [0] : vector<12x8xf32> to vector<8xf32>
    %62 = vector.shape_cast %61 : vector<8xf32> to vector<1x8xf32>
    %63 = vector.broadcast %62 : vector<1x8xf32> to vector<12x8xf32>
    %64 = arith.subf %60, %63 : vector<12x8xf32>
    %65 = math.exp %64 : vector<12x8xf32>
    %cst_34 = arith.constant dense<0.000000e+00> : vector<8xf32>
    %66 = vector.multi_reduction <add>, %65, %cst_34 [0] : vector<12x8xf32> to vector<8xf32>
    %67 = vector.shape_cast %66 : vector<8xf32> to vector<1x8xf32>
    %68 = vector.broadcast %67 : vector<1x8xf32> to vector<12x8xf32>
    %69 = arith.divf %65, %68 : vector<12x8xf32>
    %70 = arith.truncf %69 : vector<12x8xf32> to vector<12x8xbf16>
    %c0_35 = arith.constant 0 : index
    %c0_36 = arith.constant 0 : index
    %71 = vector.load %arg11[%c0_35, %c0_36] : memref<8x32xf32, #tpu.memory_space<vmem>>, vector<8x32xf32>
    %72 = arith.truncf %71 : vector<8x32xf32> to vector<8x32xbf16>
    %cst_37 = arith.constant dense<0.000000e+00> : vector<12x32xf32>
    %73 = tpu.matmul %70, %72, %cst_37 {dimension_numbers = #tpu.dot_dimension_numbers<[1], [0], [0], [1], [0, 0, 1, 1], [], []>} : vector<12x8xbf16>, vector<8x32xbf16>, vector<12x32xf32> -> vector<12x32xf32>
    %74 = arith.mulf %73, %48 : vector<12x32xf32>
    %cst_38 = arith.constant dense<0.000000e+00> : vector<32xf32>
    %75 = vector.multi_reduction <add>, %74, %cst_38 [0] : vector<12x32xf32> to vector<32xf32>
    %76 = vector.shape_cast %75 : vector<32xf32> to vector<1x32xf32>
    %77 = arith.truncf %76 : vector<1x32xf32> to vector<1x32xbf16>
    %c0_39 = arith.constant 0 : index
    %c0_40 = arith.constant 0 : index
    %78 = vector.load %arg8[%c0_39, %c0_40] : memref<32x32xf32, #tpu.memory_space<vmem>>, vector<32x32xf32>
    %79 = arith.truncf %78 : vector<32x32xf32> to vector<32x32xbf16>
    %cst_41 = arith.constant dense<0.000000e+00> : vector<1x32xf32>
    %80 = tpu.matmul %77, %79, %cst_41 {dimension_numbers = #tpu.dot_dimension_numbers<[1], [0], [0], [1], [0, 0, 1, 1], [], []>} : vector<1x32xbf16>, vector<32x32xbf16>, vector<1x32xf32> -> vector<1x32xf32>
    %c0_42 = arith.constant 0 : index
    %c0_43 = arith.constant 0 : index
    %81 = vector.load %arg9[%c0_42, %c0_43] : memref<1x32xf32, #tpu.memory_space<vmem>>, vector<1x32xf32>
    %82 = arith.addf %80, %81 : vector<1x32xf32>
    %c0_44 = arith.constant 0 : index
    %c0_45 = arith.constant 0 : index
    %83 = vector.load %arg13[%c0_44, %c0_45] : memref<224x64xf32, #tpu.memory_space<vmem>>, vector<224x64xf32>
    %84 = vector.extract_strided_slice %83 {offsets = [0, 0], sizes = [32, 64], strides = [1, 1]} : vector<224x64xf32> to vector<32x64xf32>
    %85 = arith.truncf %13 : vector<1x32xf32> to vector<1x32xbf16>
    %86 = arith.truncf %84 : vector<32x64xf32> to vector<32x64xbf16>
    %cst_46 = arith.constant dense<0.000000e+00> : vector<1x64xf32>
    %87 = tpu.matmul %85, %86, %cst_46 {dimension_numbers = #tpu.dot_dimension_numbers<[1], [0], [0], [1], [0, 0, 1, 1], [], []>} : vector<1x32xbf16>, vector<32x64xbf16>, vector<1x64xf32> -> vector<1x64xf32>
    %88 = vector.extract_strided_slice %83 {offsets = [32, 0], sizes = [32, 64], strides = [1, 1]} : vector<224x64xf32> to vector<32x64xf32>
    %89 = arith.truncf %26 : vector<1x32xf32> to vector<1x32xbf16>
    %90 = arith.truncf %88 : vector<32x64xf32> to vector<32x64xbf16>
    %cst_47 = arith.constant dense<0.000000e+00> : vector<1x64xf32>
    %91 = tpu.matmul %89, %90, %cst_47 {dimension_numbers = #tpu.dot_dimension_numbers<[1], [0], [0], [1], [0, 0, 1, 1], [], []>} : vector<1x32xbf16>, vector<32x64xbf16>, vector<1x64xf32> -> vector<1x64xf32>
    %92 = arith.addf %87, %91 : vector<1x64xf32>
    %93 = vector.extract_strided_slice %83 {offsets = [64, 0], sizes = [32, 64], strides = [1, 1]} : vector<224x64xf32> to vector<32x64xf32>
    %94 = arith.truncf %82 : vector<1x32xf32> to vector<1x32xbf16>
    %95 = arith.truncf %93 : vector<32x64xf32> to vector<32x64xbf16>
    %cst_48 = arith.constant dense<0.000000e+00> : vector<1x64xf32>
    %96 = tpu.matmul %94, %95, %cst_48 {dimension_numbers = #tpu.dot_dimension_numbers<[1], [0], [0], [1], [0, 0, 1, 1], [], []>} : vector<1x32xbf16>, vector<32x64xbf16>, vector<1x64xf32> -> vector<1x64xf32>
    %97 = arith.addf %92, %96 : vector<1x64xf32>
    %98 = vector.extract_strided_slice %30 {offsets = [0, 0], sizes = [1, 32], strides = [1, 1]} : vector<4x32xf32> to vector<1x32xf32>
    %99 = vector.extract_strided_slice %83 {offsets = [96, 0], sizes = [32, 64], strides = [1, 1]} : vector<224x64xf32> to vector<32x64xf32>
    %100 = arith.truncf %98 : vector<1x32xf32> to vector<1x32xbf16>
    %101 = arith.truncf %99 : vector<32x64xf32> to vector<32x64xbf16>
    %cst_49 = arith.constant dense<0.000000e+00> : vector<1x64xf32>
    %102 = tpu.matmul %100, %101, %cst_49 {dimension_numbers = #tpu.dot_dimension_numbers<[1], [0], [0], [1], [0, 0, 1, 1], [], []>} : vector<1x32xbf16>, vector<32x64xbf16>, vector<1x64xf32> -> vector<1x64xf32>
    %103 = arith.addf %97, %102 : vector<1x64xf32>
    %104 = vector.extract_strided_slice %30 {offsets = [1, 0], sizes = [1, 32], strides = [1, 1]} : vector<4x32xf32> to vector<1x32xf32>
    %105 = vector.extract_strided_slice %83 {offsets = [128, 0], sizes = [32, 64], strides = [1, 1]} : vector<224x64xf32> to vector<32x64xf32>
    %106 = arith.truncf %104 : vector<1x32xf32> to vector<1x32xbf16>
    %107 = arith.truncf %105 : vector<32x64xf32> to vector<32x64xbf16>
    %cst_50 = arith.constant dense<0.000000e+00> : vector<1x64xf32>
    %108 = tpu.matmul %106, %107, %cst_50 {dimension_numbers = #tpu.dot_dimension_numbers<[1], [0], [0], [1], [0, 0, 1, 1], [], []>} : vector<1x32xbf16>, vector<32x64xbf16>, vector<1x64xf32> -> vector<1x64xf32>
    %109 = arith.addf %103, %108 : vector<1x64xf32>
    %110 = vector.extract_strided_slice %30 {offsets = [2, 0], sizes = [1, 32], strides = [1, 1]} : vector<4x32xf32> to vector<1x32xf32>
    %111 = vector.extract_strided_slice %83 {offsets = [160, 0], sizes = [32, 64], strides = [1, 1]} : vector<224x64xf32> to vector<32x64xf32>
    %112 = arith.truncf %110 : vector<1x32xf32> to vector<1x32xbf16>
    %113 = arith.truncf %111 : vector<32x64xf32> to vector<32x64xbf16>
    %cst_51 = arith.constant dense<0.000000e+00> : vector<1x64xf32>
    %114 = tpu.matmul %112, %113, %cst_51 {dimension_numbers = #tpu.dot_dimension_numbers<[1], [0], [0], [1], [0, 0, 1, 1], [], []>} : vector<1x32xbf16>, vector<32x64xbf16>, vector<1x64xf32> -> vector<1x64xf32>
    %115 = arith.addf %109, %114 : vector<1x64xf32>
    %116 = vector.extract_strided_slice %30 {offsets = [3, 0], sizes = [1, 32], strides = [1, 1]} : vector<4x32xf32> to vector<1x32xf32>
    %117 = vector.extract_strided_slice %83 {offsets = [192, 0], sizes = [32, 64], strides = [1, 1]} : vector<224x64xf32> to vector<32x64xf32>
    %118 = arith.truncf %116 : vector<1x32xf32> to vector<1x32xbf16>
    %119 = arith.truncf %117 : vector<32x64xf32> to vector<32x64xbf16>
    %cst_52 = arith.constant dense<0.000000e+00> : vector<1x64xf32>
    %120 = tpu.matmul %118, %119, %cst_52 {dimension_numbers = #tpu.dot_dimension_numbers<[1], [0], [0], [1], [0, 0, 1, 1], [], []>} : vector<1x32xbf16>, vector<32x64xbf16>, vector<1x64xf32> -> vector<1x64xf32>
    %121 = arith.addf %115, %120 : vector<1x64xf32>
    %c0_53 = arith.constant 0 : index
    %c0_54 = arith.constant 0 : index
    %122 = vector.load %arg14[%c0_53, %c0_54] : memref<1x64xf32, #tpu.memory_space<vmem>>, vector<1x64xf32>
    %123 = arith.addf %121, %122 : vector<1x64xf32>
    %124 = arith.mulf %123, %123 : vector<1x64xf32>
    %cst_55 = arith.constant dense<0.000000e+00> : vector<1xf32>
    %125 = vector.multi_reduction <add>, %124, %cst_55 [1] : vector<1x64xf32> to vector<1xf32>
    %126 = vector.shape_cast %125 : vector<1xf32> to vector<1x1xf32>
    %127 = math.sqrt %126 : vector<1x1xf32>
    %cst_56 = arith.constant 1.250000e-01 : f32
    %128 = vector.broadcast %cst_56 : f32 to vector<1x1xf32>
    %129 = arith.mulf %127, %128 : vector<1x1xf32>
    %cst_57 = arith.constant 9.99999997E-7 : f32
    %130 = vector.broadcast %cst_57 : f32 to vector<1x1xf32>
    %131 = arith.addf %129, %130 : vector<1x1xf32>
    %132 = vector.broadcast %131 : vector<1x1xf32> to vector<1x64xf32>
    %133 = arith.divf %123, %132 : vector<1x64xf32>
    %c0_58 = arith.constant 0 : index
    %c0_59 = arith.constant 0 : index
    %134 = vector.load %arg15[%c0_58, %c0_59] : memref<1x64xf32, #tpu.memory_space<vmem>>, vector<1x64xf32>
    %135 = arith.mulf %133, %134 : vector<1x64xf32>
    %cst_60 = arith.constant 5.000000e-01 : f32
    %136 = vector.broadcast %cst_60 : f32 to vector<1x64xf32>
    %137 = arith.mulf %136, %135 : vector<1x64xf32>
    %cst_61 = arith.constant 0.707106769 : f32
    %138 = vector.broadcast %cst_61 : f32 to vector<1x64xf32>
    %139 = arith.mulf %135, %138 : vector<1x64xf32>
    %cst_62 = arith.constant 0.000000e+00 : f32
    %140 = vector.broadcast %cst_62 : f32 to vector<1x64xf32>
    %141 = arith.cmpf oge, %139, %140 : vector<1x64xf32>
    %cst_63 = arith.constant 1.000000e+00 : f32
    %cst_64 = arith.constant -1.000000e+00 : f32
    %142 = vector.broadcast %cst_63 : f32 to vector<1x64xf32>
    %143 = vector.broadcast %cst_64 : f32 to vector<1x64xf32>
    %144 = arith.select %141, %142, %143 : vector<1x64xi1>, vector<1x64xf32>
    %145 = math.absf %139 : vector<1x64xf32>
    %cst_65 = arith.constant 0.327591091 : f32
    %146 = vector.broadcast %cst_65 : f32 to vector<1x64xf32>
    %147 = arith.mulf %146, %145 : vector<1x64xf32>
    %cst_66 = arith.constant 1.000000e+00 : f32
    %148 = vector.broadcast %cst_66 : f32 to vector<1x64xf32>
    %149 = arith.addf %148, %147 : vector<1x64xf32>
    %cst_67 = arith.constant 1.000000e+00 : f32
    %150 = vector.broadcast %cst_67 : f32 to vector<1x64xf32>
    %151 = arith.divf %150, %149 : vector<1x64xf32>
    %cst_68 = arith.constant 1.06140542 : f32
    %152 = vector.broadcast %cst_68 : f32 to vector<1x64xf32>
    %153 = arith.mulf %152, %151 : vector<1x64xf32>
    %cst_69 = arith.constant -1.45315206 : f32
    %154 = vector.broadcast %cst_69 : f32 to vector<1x64xf32>
    %155 = arith.addf %153, %154 : vector<1x64xf32>
    %156 = arith.mulf %155, %151 : vector<1x64xf32>
    %cst_70 = arith.constant 1.42141378 : f32
    %157 = vector.broadcast %cst_70 : f32 to vector<1x64xf32>
    %158 = arith.addf %156, %157 : vector<1x64xf32>
    %159 = arith.mulf %158, %151 : vector<1x64xf32>
    %cst_71 = arith.constant -0.284496725 : f32
    %160 = vector.broadcast %cst_71 : f32 to vector<1x64xf32>
    %161 = arith.addf %159, %160 : vector<1x64xf32>
    %162 = arith.mulf %161, %151 : vector<1x64xf32>
    %cst_72 = arith.constant 0.254829586 : f32
    %163 = vector.broadcast %cst_72 : f32 to vector<1x64xf32>
    %164 = arith.addf %162, %163 : vector<1x64xf32>
    %165 = arith.mulf %164, %151 : vector<1x64xf32>
    %cst_73 = arith.constant 0.000000e+00 : f32
    %166 = vector.broadcast %cst_73 : f32 to vector<1x64xf32>
    %167 = arith.subf %166, %145 : vector<1x64xf32>
    %168 = arith.mulf %167, %145 : vector<1x64xf32>
    %169 = math.exp %168 : vector<1x64xf32>
    %170 = arith.mulf %165, %169 : vector<1x64xf32>
    %cst_74 = arith.constant 1.000000e+00 : f32
    %171 = vector.broadcast %cst_74 : f32 to vector<1x64xf32>
    %172 = arith.subf %171, %170 : vector<1x64xf32>
    %173 = arith.mulf %144, %172 : vector<1x64xf32>
    %cst_75 = arith.constant 1.000000e+00 : f32
    %174 = vector.broadcast %cst_75 : f32 to vector<1x64xf32>
    %175 = arith.addf %174, %173 : vector<1x64xf32>
    %176 = arith.mulf %137, %175 : vector<1x64xf32>
    %177 = arith.truncf %176 : vector<1x64xf32> to vector<1x64xbf16>
    %c0_76 = arith.constant 0 : index
    %c0_77 = arith.constant 0 : index
    %178 = vector.load %arg16[%c0_76, %c0_77] : memref<64x32xf32, #tpu.memory_space<vmem>>, vector<64x32xf32>
    %179 = arith.truncf %178 : vector<64x32xf32> to vector<64x32xbf16>
    %cst_78 = arith.constant dense<0.000000e+00> : vector<1x32xf32>
    %180 = tpu.matmul %177, %179, %cst_78 {dimension_numbers = #tpu.dot_dimension_numbers<[1], [0], [0], [1], [0, 0, 1, 1], [], []>} : vector<1x64xbf16>, vector<64x32xbf16>, vector<1x32xf32> -> vector<1x32xf32>
    %c0_79 = arith.constant 0 : index
    %c0_80 = arith.constant 0 : index
    %181 = vector.load %arg17[%c0_79, %c0_80] : memref<1x32xf32, #tpu.memory_space<vmem>>, vector<1x32xf32>
    %182 = arith.addf %180, %181 : vector<1x32xf32>
    %c0_81 = arith.constant 0 : index
    %c0_82 = arith.constant 0 : index
    %c0_83 = arith.constant 0 : index
    %183 = vector.load %arg18[%c0_81, %c0_82, %c0_83] : memref<1x1x32xf32, #tpu.memory_space<vmem>>, vector<1x1x32xf32>
    %184 = vector.shape_cast %183 : vector<1x1x32xf32> to vector<1x32xf32>
    %185 = vector.shape_cast %182 : vector<1x32xf32> to vector<1x1x32xf32>
    tpu.vector_store %arg18[%c0_81, %c0_82, %c0_83], %185 {strides = array<i32>} : memref<1x1x32xf32, #tpu.memory_space<vmem>>, vector<1x1x32xf32>,
    return
  }
  func.func @transform_0(%arg0: i32) -> (i32, i32, i32) {
    %c0_i32 = arith.constant 0 : i32
    %c0_i32_0 = arith.constant 0 : i32
    %c0_i32_1 = arith.constant 0 : i32
    return %arg0, %c0_i32, %c0_i32_0 : i32, i32, i32
  }
  func.func @transform_1(%arg0: i32) -> (i32, i32, i32) {
    %c0_i32 = arith.constant 0 : i32
    %c0_i32_0 = arith.constant 0 : i32
    %c0_i32_1 = arith.constant 0 : i32
    return %arg0, %c0_i32, %c0_i32_0 : i32, i32, i32
  }
  func.func @transform_2(%arg0: i32) -> (i32, i32) {
    %c0_i32 = arith.constant 0 : i32
    %c0_i32_0 = arith.constant 0 : i32
    %c0_i32_1 = arith.constant 0 : i32
    return %c0_i32, %c0_i32_0 : i32, i32
  }
  func.func @transform_3(%arg0: i32) -> (i32, i32) {
    %c0_i32 = arith.constant 0 : i32
    %c0_i32_0 = arith.constant 0 : i32
    %c0_i32_1 = arith.constant 0 : i32
    return %c0_i32, %c0_i32_0 : i32, i32
  }
  func.func @transform_4(%arg0: i32) -> (i32, i32) {
    %c0_i32 = arith.constant 0 : i32
    %c0_i32_0 = arith.constant 0 : i32
    %c0_i32_1 = arith.constant 0 : i32
    return %c0_i32, %c0_i32_0 : i32, i32
  }
  func.func @transform_5(%arg0: i32) -> (i32, i32) {
    %c0_i32 = arith.constant 0 : i32
    %c0_i32_0 = arith.constant 0 : i32
    %c0_i32_1 = arith.constant 0 : i32
    return %c0_i32, %c0_i32_0 : i32, i32
  }
  func.func @transform_6(%arg0: i32) -> (i32, i32) {
    %c0_i32 = arith.constant 0 : i32
    %c0_i32_0 = arith.constant 0 : i32
    %c0_i32_1 = arith.constant 0 : i32
    return %c0_i32, %c0_i32_0 : i32, i32
  }
  func.func @transform_7(%arg0: i32) -> (i32, i32) {
    %c0_i32 = arith.constant 0 : i32
    %c0_i32_0 = arith.constant 0 : i32
    %c0_i32_1 = arith.constant 0 : i32
    return %c0_i32, %c0_i32_0 : i32, i32
  }
  func.func @transform_8(%arg0: i32) -> (i32, i32) {
    %c0_i32 = arith.constant 0 : i32
    %c0_i32_0 = arith.constant 0 : i32
    %c0_i32_1 = arith.constant 0 : i32
    return %c0_i32, %c0_i32_0 : i32, i32
  }
  func.func @transform_9(%arg0: i32) -> (i32, i32) {
    %c0_i32 = arith.constant 0 : i32
    %c0_i32_0 = arith.constant 0 : i32
    %c0_i32_1 = arith.constant 0 : i32
    return %c0_i32, %c0_i32_0 : i32, i32
  }
  func.func @transform_10(%arg0: i32) -> (i32, i32) {
    %c0_i32 = arith.constant 0 : i32
    %c0_i32_0 = arith.constant 0 : i32
    %c0_i32_1 = arith.constant 0 : i32
    return %c0_i32, %c0_i32_0 : i32, i32
  }
  func.func @transform_11(%arg0: i32) -> (i32, i32) {
    %c0_i32 = arith.constant 0 : i32
    %c0_i32_0 = arith.constant 0 : i32
    %c0_i32_1 = arith.constant 0 : i32
    return %c0_i32, %c0_i32_0 : i32, i32
  }
  func.func @transform_12(%arg0: i32) -> (i32, i32) {
    %c0_i32 = arith.constant 0 : i32
    %c0_i32_0 = arith.constant 0 : i32
    %c0_i32_1 = arith.constant 0 : i32
    return %c0_i32, %c0_i32_0 : i32, i32
  }
  func.func @transform_13(%arg0: i32) -> (i32, i32) {
    %c0_i32 = arith.constant 0 : i32
    %c0_i32_0 = arith.constant 0 : i32
    %c0_i32_1 = arith.constant 0 : i32
    return %c0_i32, %c0_i32_0 : i32, i32
  }
  func.func @transform_14(%arg0: i32) -> (i32, i32) {
    %c0_i32 = arith.constant 0 : i32
    %c0_i32_0 = arith.constant 0 : i32
    %c0_i32_1 = arith.constant 0 : i32
    return %c0_i32, %c0_i32_0 : i32, i32
  }
  func.func @transform_15(%arg0: i32) -> (i32, i32) {
    %c0_i32 = arith.constant 0 : i32
    %c0_i32_0 = arith.constant 0 : i32
    %c0_i32_1 = arith.constant 0 : i32
    return %c0_i32, %c0_i32_0 : i32, i32
  }
  func.func @transform_16(%arg0: i32) -> (i32, i32) {
    %c0_i32 = arith.constant 0 : i32
    %c0_i32_0 = arith.constant 0 : i32
    %c0_i32_1 = arith.constant 0 : i32
    return %c0_i32, %c0_i32_0 : i32, i32
  }
  func.func @transform_17(%arg0: i32) -> (i32, i32, i32) {
    %c0_i32 = arith.constant 0 : i32
    %c0_i32_0 = arith.constant 0 : i32
    %c0_i32_1 = arith.constant 0 : i32
    return %arg0, %c0_i32, %c0_i32_0 : i32, i32, i32
  }
}

</mosaic_0001>

<bundles_post_ra>
// kernel: multi_scale_pooling.1
= control target key start
LH: loop header
LB: loop body
LE: loop exit
PB: predicated region body
PF: predicated region fallthrough
CT: control target
= control target key end

     0   :  { %s2361_s0 = inlined_call_operand.vmem [shape: f32[2,12,32], index: 0, kind: input, shape index: {}]   ;;  %s2362_s1 = inlined_call_operand.vmem [shape: f32[2,12,1], index: 1, kind: input, shape index: {}]   ;;  %s2363_s2 = inlined_call_operand.vmem [shape: f32[1,32], index: 2, kind: input, shape index: {}]   ;;  %s2364_s3 = inlined_call_operand.vmem [shape: f32[32,32], index: 3, kind: input, shape index: {}]   ;;  %s2365_s4 = inlined_call_operand.vmem [shape: f32[1,32], index: 4, kind: input, shape index: {}]   ;;  %s2366_s5 = inlined_call_operand.vmem [shape: f32[32,64], index: 5, kind: input, shape index: {}]   ;;  %s2367_s6 = inlined_call_operand.vmem [shape: f32[1,64], index: 6, kind: input, shape index: {}]   ;;  %s2368_s7 = inlined_call_operand.vmem [shape: f32[32,32], index: 7, kind: input, shape index: {}]   ;;  %s2369_s8 = inlined_call_operand.vmem [shape: f32[1,32], index: 8, kind: input, shape index: {}]   ;;  %s2370_s9 = inlined_call_operand.vmem [shape: f32[32,8], index: 9, kind: input, shape index: {}]   ;;  %s2371_s10 = inlined_call_operand.vmem [shape: f32[8,32], index: 10, kind: input, shape index: {}]   ;;  %s2372_s11 = inlined_call_operand.vmem [shape: f32[4,12], index: 11, kind: input, shape index: {}]   ;;  %s2373_s12 = inlined_call_operand.vmem [shape: f32[224,64], index: 12, kind: input, shape index: {}]   ;;  %s2374_s13 = inlined_call_operand.vmem [shape: f32[1,64], index: 13, kind: input, shape index: {}]   ;;  %s2375_s14 = inlined_call_operand.vmem [shape: f32[1,64], index: 14, kind: input, shape index: {}]   ;;  %s2376_s15 = inlined_call_operand.vmem [shape: f32[64,32], index: 15, kind: input, shape index: {}]   ;;  %s2377_s16 = inlined_call_operand.vmem [shape: f32[1,32], index: 16, kind: input, shape index: {}]   ;;  %s2378_s17 = inlined_call_operand.hbm [shape: f32[2,1,32], index: 17, kind: output, shape index: {}]  }
   0x1   :  { %2379 = sst [smem:[#allocation6_spill]] %s2361_s0 }
   0x2   :  { %2380 = sst [smem:[#allocation7_spill]] %s2362_s1 }
   0x3   :  { %2381 = sst [smem:[#allocation8_spill]] %s2363_s2 }
   0x4   :  { %2382 = sst [smem:[#allocation9_spill]] %s2364_s3 }
   0x5   :  { %2383 = sst [smem:[#allocation10_spill]] %s2372_s11 }
   0x6   :  { %22 = vsyncpa [#allocation3], 0 }
   0x7   :  { %24 = vsyncpa [#allocation3 + $0x1], 0  ;;  %s1958_s24 = smov 0   ;;  %s1960_s25 = smov 0  }
   0x8   :  { %s1962_s26 = smov 0   ;;  %s1964_s27 = smov 0  }
   0x9 LB: > { %s1979_s28 = sadd.s32 4294967295, %s1860_s27   ;;  %s1554_s29 = sadd.s32 4294967294, %s1860_s27   ;;  %s1860_s27 = sphi %s1964_s27, %s2396_s27   ;;  %s1856_s26 = sphi %s1962_s26, %s2395_s26   ;;  %s1852_s25 = sphi %s1960_s25, %s2394_s25   ;;  %s1848_s24 = sphi %s1958_s24, %s2393_s24  }
   0xa   : > { %s1983_s0 = sadd.s32 1, %s1860_s27   ;;  %s404_s30 = sadd.s32 1, %s1856_s26 }
   0xb   : > { %s401_s18 = ssub.s32 %s1860_s27, %s1983_s0  ;;  %p414_p0 = scmp.ne.s32.totalorder %s1856_s26, %s1852_s25 }
   0xc   : > { %p402_p1 = scmp.eq.s32.totalorder %s401_s18, 0  ;;  %p415_p2 = scmp.eq.s32.totalorder %s1979_s28, 1 }
   0xd   : > { %p420_p3 = scmp.ne.s32.totalorder %s1852_s25, %s1848_s24  ;;  %p421_p4 = scmp.eq.s32.totalorder %s1554_s29, 1 }
   0xe   : > { %s1994_s19 = scalar_select %p402_p1, %s1856_s26, %s404_s30  }
   0xf   : > { %p1996_p5 = por %p415_p2, %p414_p0  ;;  %p2000_p6 = por %p421_p4, %p420_p3 }
  0x10   : > { %2384 = sst [smem:[#allocation5_spill]] %s1994_s19  ;;  %p1557_p7 = scmp.ge.s32.totalorder %s1860_s27, 1 }
  0x11   : > { %p500_p8 = scmp.lt.s32.totalorder %s1860_s27, 3 }
  0x13   : > { %p501_p9 = pnand %p1557_p7, %p500_p8 }
  0x14   : > { %p556_p10 = scmp.lt.s32.totalorder (!%p501_p9), %s1979_s28, 1  ;;  %v1862_v0 = vmov (!%p501_p9), 0   ;;  %s2387_s30 = sld [smem:[#allocation7_spill]] (!%p501_p9)  ;;  %v1863_v3 = vmov (!%p501_p9), 0.0   ;;  %vm1864_vm0 = vmmov (!%p501_p9), 0   ;;  %vm595_vm2 = vcmask (!%p501_p9), 261120  }
  0x15   : > { %504 = sbr.rel (%p501_p9) target bundleno = 1822 (0x71e), region = 88  ;;  %1780 = vset.pattern.permute.xlu0 (!%p501_p9), %v1862_v0  ;;  %1781 = vset.pattern.permute.xlu1 (!%p501_p9), %v1862_v0  ;;  %s2388_s29 = sld [smem:[#allocation6_spill]] (!%p501_p9)  ;;  %vm597_vm3 = vcmask (!%p501_p9), 257024   ;;  %vm646_vm4 = vcmask (!%p501_p9), 1045504   ;;  %vm642_vm5 = vcmask (!%p501_p9), 97280   ;;  %v744_v25 = vld [vmem:[%s2366_s5] sm:$0xff] (!%p501_p9)  ;;  %v801_v50 = vlaneseq (!%p501_p9) }
  0x16   : > { %1624 = vmatprep.subr.bf16.mxu0 (!%p501_p9), %v1863_v3  ;;  %1646 = vmatprep.subr.bf16.mxu1 (!%p501_p9), %v1863_v3  ;;  %s2389_s11 = sld [smem:[#allocation10_spill]] (!%p501_p9)  ;;  %s2390_s3 = sld [smem:[#allocation9_spill]] (!%p501_p9)  ;;  %v745_v26 = vld [vmem:[%s2366_s5 + $0x8] sm:$0xff] (!%p501_p9)  ;;  %v746_v29 = vld [vmem:[%s2366_s5 + $0x10] sm:$0xff] (!%p501_p9)  ;;  %v747_v30 = vld [vmem:[%s2366_s5 + $0x18] sm:$0xff] (!%p501_p9)  ;;  %vm583_vm7 = vcmask (!%p501_p9), 7168  }
  0x17   : > { %1626 = vmatprep.mubr.msk.bf16.mxu0 (!%p501_p9), %vm1864_vm0, %v1863_v3  ;;  %1650 = vmatprep.mubr.msk.bf16.mxu1 (!%p501_p9), %vm1864_vm0, %v1863_v3  ;;  %s2391_s2 = sld [smem:[#allocation8_spill]] (!%p501_p9)  ;;  %v748_v28 = vpack.c.bf16 (!%p501_p9), %v745_v26, %v744_v25  ;;  %v749_v31 = vpack.c.bf16 (!%p501_p9), %v747_v30, %v746_v29  ;;  %v808_v34 = vld [vmem:[%s2370_s9] sm:$0xff] (!%p501_p9)  ;;  %v809_v35 = vld [vmem:[%s2370_s9 + $0x8] sm:$0xff] (!%p501_p9)  ;;  %v810_v37 = vld [vmem:[%s2370_s9 + $0x10] sm:$0xff] (!%p501_p9)  ;;  %vm585_vm8 = vcmask (!%p501_p9), 3072   ;;  %v802_v55 = vshrl.u32 (!%p501_p9), %v801_v50, 7 }
  0x18   : > { %v812_v36 = vpack.c.bf16 (!%p501_p9), %v809_v35, %v808_v34  ;;  %v811_v38 = vld [vmem:[%s2370_s9 + $0x18] sm:$0xff] (!%p501_p9)  ;;  %v698_v51 = vld [vmem:[%s2365_s4] sm:$0x1] (!%p501_p9)  ;;  %vm895_vm9 = vcmask (!%p501_p9), 1043456   ;;  %vm860_vm11 = vcmask (!%p501_p9), 64512   ;;  %vm862_vm12 = vcmask (!%p501_p9), 60416  }
  0x19   : > { %v813_v39 = vpack.c.bf16 (!%p501_p9), %v811_v38, %v810_v37  ;;  %v803_v61 = vsub.s32 (!%p501_p9), 0, %v802_v55  ;;  %v1564_v62 = vld [vmem:[%s2367_s6] ss:$0 sm:$0xff] (!%p501_p9)  ;;  %vm1370_vm15 = vcmask (!%p501_p9), 516096  }
  0x1a   : > { %1647 = vmatpush3.bf16.msra.mxu1 (!%p501_p9), %v812_v36 }
  0x1b   : > { %1648 = vmatprep.subr.bf16.mxu1 (!%p501_p9), %v1863_v3 }
  0x1c   : > { %s557_s21 = scalar_select %p556_p10, %s1979_s28, 1  ;;  %v639_v11 = vld [vmem:[%s2389_s11] sm:$0xf]  ;;  %v693_v16 = vld [vmem:[%s2390_s3 + $0x8] sm:$0xff]  ;;  %v694_v21 = vld [vmem:[%s2390_s3 + $0x10] sm:$0xff] }
  0x1d   : > { %v692_v15 = vld [vmem:[%s2390_s3] sm:$0xff]  ;;  %v640_v19 = vpack.c.bf16 %v639_v11, %v639_v11  ;;  %v695_v22 = vld [vmem:[%s2390_s3 + $0x18] sm:$0xff]  ;;  %s1577_s3 = sshll.u32 %s1979_s28, 4 }
  0x1e   : > { %s1580_s22 = sshll.u32 %s557_s21, 4  ;;  %v696_v20 = vpack.c.bf16 %v693_v16, %v692_v15  ;;  %v697_v23 = vpack.c.bf16 %v695_v22, %v694_v21  ;;  %v690_v24 = vld [vmem:[%s2391_s2] sm:$0x1]  ;;  %1649 = vmatpush3.bf16.msra.mxu1 %v813_v39  ;;  %s1867_s21 = smov [#allocation2]  }
  0x1f   : > { %s565_s18 = scalar_lea.vmem %s2387_s30, %s1580_s22  ;;  %s560_s30 = scalar_lea.vmem %s2388_s29, %s1580_s22  ;;  %v691_v27 = vpack.c.bf16 %v690_v24, %v690_v24  ;;  %1660 = vmatprep.subr.bf16.mxu1 %v1863_v3 }
  0x20   : > { %v2013_v1 = vld [vmem:[%s565_s18] sm:$0xff]  ;;  %v2016_v2 = vld [vmem:[%s565_s18 + $0x8] sm:$0xf]  ;;  %s1865_s18 = smov 96   ;;  %s554_s22 = sand.u32 1, %s1852_s25  }
  0x21   : > { %573 = vperm.xlu0 %1780, %v2013_v1   ;;  %vm613_vm1 = vcmp.gt.f32.partialorder %v2013_v1, 0.0  ;;  %v2030_v6 = vld [vmem:[%s560_s30] sm:$0xff]  ;;  %v2032_v7 = vld [vmem:[%s560_s30 + $0x8] sm:$0xf]  ;;  %vm614_vm6 = vcmp.gt.f32.partialorder %v2016_v2, 0.0  ;;  %v584_v40 = vsel %vm583_vm7, %v2013_v1, 0.0  ;;  %s2319_s30 = scalar_lea.hbm %s2378_s17, %s1577_s3 }
  0x22   : > { %v615_v4 = vsel %vm613_vm1, 1, %v1862_v0  ;;  %v743_v32 = vpack.c.bf16 %v2032_v7, %v2030_v6  ;;  %v616_v33 = vsel %vm614_vm6, 1, %v1862_v0  ;;  %v586_v41 = vsel %vm585_vm8, %v2016_v2, 0.0  ;;  %s555_s23 = scalar_lea.vmem [#allocation2], %s554_s22  ;;  %s1475_s28 = scalar_lea.sflag [#allocation3], %s554_s22 }
  0x23   : > { %618 = vperm.xlu1 %1781, %v615_v4   ;;  %v587_v42 = vadd.f32 %v586_v41, %v584_v40  ;;  %s1487_s11 = sshll.u32 %s555_s23, 4  ;;  %s1802_s2 = sshll.u32 %s1867_s21, 4  ;;  %s2321_s11 = int_to_ptr.vmem [resolvable:$true] %s1487_s11  ;;  %s1803_s2 = int_to_ptr.vmem [resolvable:$false] %s1802_s2 }
  0x24   : > { %s1804_s29 = scalar_lea.vmem %s1803_s2, 32  ;;  %p1805_p0 = scmp.lt.s32.totalorder %s2321_s11, %s1803_s2 }
  0x25   : > { %578 = vperm.xlu0 %1780, %v2016_v2   ;;  %v588_v43 = vrot.slane %v587_v42, 4 }
  0x27   : > { %621 = vperm.xlu1 %1781, %v616_v33   ;;  %v589_v44 = vadd.f32 %v588_v43, %v587_v42 }
  0x29   : > { %v590_v49 = vrot.slane %v589_v44, 2 }
  0x2b   : > { %v591_v52 = vadd.f32 %v590_v49, %v589_v44 }
  0x2d   : > { %v592_v59 = vrot.slane %v591_v52, 1 }
  0x2f   : > { %v593_v63 = vadd.f32 %v592_v59, %v591_v52 }
  0x31   : > { %v594_v11 = vmax.f32 %v593_v63, 1e-09 }
  0xa0   : > { %v574_v5 = vpop.permute.xlu0 %573 }
  0xa1   : > { %v581_v8 = vmul.f32 %v574_v5, %v2030_v6 }
  0xa3   : > { %v596_v12 = vsel %vm595_vm2, %v581_v8, 0.0 }
  0xa4   : > { %v579_v9 = vpop.permute.xlu0 %578 }
  0xa5   : > { %v582_v10 = vmul.f32 %v579_v9, %v2032_v7 }
  0xa7   : > { %v598_v13 = vsel %vm597_vm3, %v582_v10, 0.0  ;;  %v641_v14 = vpack.c.bf16 %v582_v10, %v581_v8 }
  0xa8   : > { %v2047_v17 = vadd.f32 %v598_v13, %v596_v12 }
  0xa9   : > { %v648_v18 = vsel %vm646_vm4, %v641_v14, 0  ;;  %v890_v14 = vld [vmem:[%s2371_s10] sm:$0xff]  ;;  %vm1472_vm4 = vcmask 253952  }
  0xaa   : > { %1625 = vmatpush3.bf16.msra.mxu0 %v648_v18  ;;  %v891_v15 = vpack.c.bf16 %v890_v14, %v890_v14  ;;  %v619_v18 = vpop.permute.xlu1 %618 }
  0xab   : > { %1630 = vmatprep.subr.bf16.mxu0 %v1863_v3  ;;  %vm623_vm10 = vcmp.eq.s32.totalorder %v619_v18, 1 }
  0xac   : > { %v897_v16 = vsel %vm895_vm9, %v891_v15, 0  ;;  %v625_v39 = vsel %vm623_vm10, %v2030_v6, -inf  ;;  %v962_v15 = vld [vmem:[%s2368_s7 + $0x10] sm:$0xff] }
  0xad   : > { %1627 = vmatmul.mubr.msk.bf16.vlgmr.msra.gmra.mrb[0].mxu0 %vm642_vm5, %v640_v19  ;;  %v627_v41 = vsel %vm595_vm2, %v625_v39, -inf }
  0xae   : > { %1631 = vmatpush3.bf16.msra.mxu0 %v696_v20  ;;  %1634 = vmatprep.mubr.msk.bf16.mxu0 %vm1864_vm0, %v1863_v3  ;;  %v622_v20 = vpop.permute.xlu1 %621 }
  0xaf   : > { %1632 = vmatprep.subr.bf16.mxu0 %v1863_v3  ;;  %vm624_vm13 = vcmp.eq.s32.totalorder %v622_v20, 1  ;;  %v1019_v20 = vld [vmem:[%s2373_s12 + $0x48] sm:$0xff] }
  0xb0   : > { %v626_v40 = vsel %vm624_vm13, %v2032_v7, -inf }
  0xb1   : > { %v628_v42 = vsel %vm597_vm3, %v626_v40, -inf }
  0xb2   : > { %1633 = vmatpush3.bf16.msra.mxu0 %v697_v23  ;;  %v629_v44 = vmax.f32 %v627_v41, %v628_v42 }
  0xb3   : > { %1638 = vmatprep.subr.bf16.mxu0 %v1863_v3 }
  0xb4   : > { %v630_v50 = vrot.slane %v629_v44, 4 }
  0xb5   : > { %1635 = vmatmul.mubr.msk.bf16.vlgmr.msra.gmra.mrb[4].mxu0 %vm595_vm2, %v691_v27 }
  0xb6   : > { %1639 = vmatpush3.bf16.msra.mxu0 %v748_v28  ;;  %1642 = vmatprep.mubr.msk.bf16.mxu0 %vm1864_vm0, %v1863_v3 }
  0xb7   : > { %1640 = vmatprep.subr.bf16.mxu0 %v1863_v3 }
  0xba   : > { %1641 = vmatpush3.bf16.msra.mxu0 %v749_v31 }
  0xbb   : > { %1654 = vmatprep.subr.bf16.mxu0 %v1863_v3 }
  0xbd   : > { %1643 = vmatmul.mubr.msk.bf16.vlgmr.msra.gmra.mrb[8].mxu0 %vm595_vm2, %v743_v32 }
  0xbe   : > { %1656 = vmatprep.mubr.msk.bf16.mxu0 %vm1864_vm0, %v1863_v3  ;;  %1655 = vmatpush3.bf16.msra.mxu0 %v897_v16  ;;  %v963_v16 = vld [vmem:[%s2368_s7 + $0x18] sm:$0xff] }
  0xbf   : > { %1668 = vmatprep.subr.bf16.mxu0 %v1863_v3  ;;  %v965_v18 = vpack.c.bf16 %v963_v16, %v962_v15  ;;  %v1027_v15 = vld [vmem:[%s2373_s12 + $0x88] sm:$0xff] }
 0x180   : > { %v2103_v45 = vpop.f32.mrb[0].mxu0 }
 0x181   : > { %v1628_v46 = vpop.f32.mrb[1].mxu0 }
 0x182   : > { %v687_v47 = vpop.f32.mrb[2].mxu0 }
 0x183   : > { %v1629_v48 = vpop.f32.mrb[3].mxu0 }
 0x188   : > { %v736_v53 = vpop.f32.mrb[4].mxu0 }
 0x189   : > { %v737_v54 = vadd.f32 %v736_v53, %v698_v51  ;;  %v1636_v56 = vpop.f32.mrb[5].mxu0  ;;  %v631_v53 = vmax.f32 %v629_v44, %v630_v50 }
 0x18a   : > { %v739_v57 = vpop.f32.mrb[6].mxu0 }
 0x18b   : > { %v1637_v58 = vpop.f32.mrb[7].mxu0  ;;  %v742_v60 = vmul.f32 0.5, %v737_v54  ;;  %v632_v55 = vrot.slane %v631_v53, 2 }
 0x18d   : > { %v804_v1 = vrot.slane %v742_v60, %v803_v61  ;;  %v633_v57 = vmax.f32 %v631_v53, %v632_v55  ;;  %v1014_v60 = vld [vmem:[%s2373_s12 + $0x20] sm:$0xff]  ;;  %v1015_v61 = vld [vmem:[%s2373_s12 + $0x28] sm:$0xff]  ;;  %v1012_v53 = vld [vmem:[%s2373_s12 + $0x10] sm:$0xff] }
 0x18f   : > { %v634_v58 = vrot.slane %v633_v57, 1 }
 0x190   : > { %v794_v0 = vpop.f32.mrb[8].mxu0 }
 0x191   : > { %v795_v2 = vadd.f32 %v1564_v62, %v794_v0  ;;  %v1644_v4 = vpop.f32.mrb[9].mxu0  ;;  %v635_v59 = vmax.f32 %v633_v57, %v634_v58  ;;  %v1022_v57 = vld [vmem:[%s2373_s12 + $0x60] sm:$0xff]  ;;  %v1023_v58 = vld [vmem:[%s2373_s12 + $0x68] sm:$0xff] }
 0x192   : > { %v797_v5 = vpop.f32.mrb[10].mxu0 }
 0x193   : > { %v805_v8 = vmul.f32 %v804_v1, %v795_v2  ;;  %v798_v9 = vadd.f32 %v1564_v62, %v797_v5  ;;  %942 = vrot.lane.b32.xlu0 %v795_v2, %s1865_s18  ;;  %v1645_v10 = vpop.f32.mrb[11].mxu0  ;;  %v636_v63 = vand.u32 2147483647, %v635_v59  ;;  %v1042_v2 = vpack.c.bf16 %v1015_v61, %v1014_v60  ;;  %v1016_v5 = vld [vmem:[%s2373_s12 + $0x30] sm:$0xff] }
 0x194   : > { %v1024_v61 = vld [vmem:[%s2373_s12 + $0x70] sm:$0xff] }
 0x195   : > { %v806_v12 = vmul.f32 %v804_v1, %v798_v9  ;;  %944 = vrot.lane.b32.xlu1 %v798_v9, %s1865_s18  ;;  %vm637_vm14 = vcmp.eq.f32.partialorder %v636_v63, inf  ;;  %s1798_s18 = scalar_lea.vmem %s2321_s11, 16 }
 0x196   : > { %v638_v10 = vsel %vm637_vm14, 0.0, %v635_v59  ;;  %v1178_v59 = vpack.c.bf16 %v1023_v58, %v1022_v57  ;;  %p1799_p11 = scmp.ne.s32.totalorder %s2321_s11, %s1798_s18  ;;  %p1806_p1 = scmp.lt.s32.totalorder %s1804_s29, %s1798_s18 }
 0x197   : > { %v807_v13 = vpack.c.bf16 %v806_v12, %v805_v8  ;;  %608 = vperm.xlu0 %1780, %v594_v11   ;;  %v1017_v8 = vld [vmem:[%s2373_s12 + $0x38] sm:$0xff]  ;;  %v1041_v11 = vpack.c.bf16 %v638_v10, %v638_v10  ;;  %v960_v12 = vld [vmem:[%s2368_s7] sm:$0xff]  ;;  %v1020_v10 = vld [vmem:[%s2373_s12 + $0x50] sm:$0xff] }
 0x198   : > { %v1043_v9 = vpack.c.bf16 %v1017_v8, %v1016_v5  ;;  %v1032_v5 = vld [vmem:[%s2373_s12 + $0xb0] sm:$0xff]  ;;  %v1033_v8 = vld [vmem:[%s2373_s12 + $0xb8] sm:$0xff]  ;;  %p1800_p12 = pnand %p1799_p11, %p1996_p5  ;;  %p1807_p2 = por %p1806_p1, %p1805_p0 }
 0x199   : > { %1651 = vmatmul.mubr.msk.bf16.vlgmr.msra.gmra.mrb[0].mxu1 %vm595_vm2, %v807_v13  ;;  %v961_v13 = vld [vmem:[%s2368_s7 + $0x8] sm:$0xff] }
 0x19a   : > { %1664 = vmatprep.mubr.msk.bf16.mxu1 %vm1864_vm0, %v1863_v3  ;;  %v964_v14 = vpack.c.bf16 %v961_v13, %v960_v12  ;;  %v966_v13 = vld [vmem:[%s2369_s8] sm:$0x1]  ;;  %p1801_p13 = pneg %p1800_p12 }
 0x19c   : > { %1661 = vmatpush3.bf16.msra.mxu1 %v964_v14  ;;  %v1026_v14 = vld [vmem:[%s2373_s12 + $0x80] sm:$0xff]  ;;  %p1808_p3 = pnand %p1807_p2, %p1801_p13 }
 0x19d   : > { %1662 = vmatprep.subr.bf16.mxu1 %v1863_v3 }
 0x1a0   : > { %1663 = vmatpush3.bf16.msra.mxu1 %v965_v18 }
 0x1a1   : > { %1676 = vmatprep.subr.bf16.mxu1 %v1863_v3 }
 0x26c   : > { %v851_v19 = vpop.f32.mrb[0].mxu1 }
 0x26d   : > { %v858_v21 = vsel %vm623_vm10, %v851_v19, -1e+30  ;;  %v1652_v22 = vpop.f32.mrb[1].mxu1  ;;  %v1018_v19 = vld [vmem:[%s2373_s12 + $0x40] sm:$0xff] }
 0x26e   : > { %v854_v23 = vpop.f32.mrb[2].mxu1  ;;  %v861_v26 = vsel %vm860_vm11, %v858_v21, -inf  ;;  %v943_v22 = vpop.permute.xlu0 %942 }
 0x26f   : > { %v859_v24 = vsel %vm624_vm13, %v854_v23, -1e+30  ;;  %v1653_v25 = vpop.f32.mrb[3].mxu1 }
 0x270   : > { %v863_v27 = vsel %vm862_vm12, %v859_v24, -inf }
 0x271   : > { %v864_v28 = vmax.f32 %v861_v26, %v863_v27  ;;  %v600_v26 = vrot.slane %v2047_v17, 4  ;;  %v945_v27 = vpop.permute.xlu1 %944 }
 0x273   : > { %v865_v29 = vrot.slane %v864_v28, 4 }
 0x275   : > { %v866_v30 = vmax.f32 %v864_v28, %v865_v29 }
 0x277   : > { %v867_v31 = vrot.slane %v866_v30, 2 }
 0x279   : > { %v868_v32 = vmax.f32 %v866_v30, %v867_v31 }
 0x27b   : > { %v869_v33 = vrot.slane %v868_v32, 1 }
 0x27d   : > { %v870_v34 = vmax.f32 %v868_v32, %v869_v33  ;;  %v601_v33 = vadd.f32 %v600_v26, %v2047_v17  ;;  %v1011_v17 = vld [vmem:[%s2373_s12 + $0x8] sm:$0xff] }
 0x27f   : > { %v871_v35 = vsub.f32 %v858_v21, %v870_v34  ;;  %v872_v36 = vsub.f32 %v859_v24, %v870_v34  ;;  %v1131_v21 = vpack.c.bf16 %v1019_v20, %v1018_v19  ;;  %v602_v39 = vrot.slane %v601_v33, 2 }
 0x281   : > { %v873_v37 = vmul.f32 1.442695, %v871_v35  ;;  %v875_v38 = vmul.f32 1.442695, %v872_v36  ;;  %v609_v35 = vpop.permute.xlu0 %608  ;;  %v603_v44 = vadd.f32 %v602_v39, %v601_v33 }
 0x283   : > { %1782 = vpow2.f32 %v873_v37 }
 0x284   : > { %1784 = vpow2.f32 %v875_v38 }
 0x28d   : > { %v1783_v43 = vpop.eup %1782 }
 0x28e   : > { %v1785_v46 = vpop.eup %1784  ;;  %v877_v47 = vsel %vm860_vm11, %v1783_v43, 0.0 }
 0x28f   : > { %v878_v48 = vsel %vm862_vm12, %v1785_v46, 0.0 }
 0x290   : > { %v879_v49 = vadd.f32 %v878_v48, %v877_v47  ;;  %v1010_v48 = vld [vmem:[%s2373_s12] sm:$0xff] }
 0x292   : > { %v880_v51 = vrot.slane %v879_v49, 4 }
 0x294   : > { %v881_v52 = vadd.f32 %v880_v51, %v879_v49  ;;  %v604_v49 = vrot.slane %v603_v44, 1  ;;  %v1039_v51 = vpack.c.bf16 %v1011_v17, %v1010_v48 }
 0x296   : > { %v882_v6 = vrot.slane %v881_v52, 2  ;;  %v605_v55 = vadd.f32 %v604_v49, %v603_v44 }
 0x298   : > { %v883_v54 = vadd.f32 %v882_v6, %v881_v52  ;;  %v1013_v6 = vld [vmem:[%s2373_s12 + $0x18] sm:$0xff] }
 0x29a   : > { %v884_v7 = vrot.slane %v883_v54, 1 }
 0x29c   : > { %v885_v56 = vadd.f32 %v884_v7, %v883_v54  ;;  %v1040_v7 = vpack.c.bf16 %v1013_v6, %v1012_v53 }
 0x29e   : > { %1786 = vrcp.f32 %v885_v56 }
 0x29f   : > { %1788 = vrcp.f32 %v609_v35 }
 0x2a8   : > { %v1787_v62 = vpop.eup %1786 }
 0x2a9   : > { %v888_v0 = vmul.f32 %v1787_v62, %v1785_v46  ;;  %v887_v1 = vmul.f32 %v1787_v62, %v1783_v43  ;;  %v1789_v54 = vpop.eup %1788  ;;  %v1025_v62 = vld [vmem:[%s2373_s12 + $0x78] sm:$0xff] }
 0x2aa   : > { %v612_v56 = vmul.f32 %v1789_v54, %v605_v55  ;;  %v1179_v63 = vpack.c.bf16 %v1025_v62, %v1024_v61 }
 0x2ab   : > { %v889_v4 = vpack.c.bf16 %v888_v0, %v887_v1  ;;  %v1030_v0 = vld [vmem:[%s2373_s12 + $0xa0] sm:$0xff]  ;;  %v1031_v1 = vld [vmem:[%s2373_s12 + $0xa8] sm:$0xff] }
 0x2ac   : > { %v1038_v60 = vpack.c.bf16 %v612_v56, %v612_v56 }
 0x2ad   : > { %1657 = vmatmul.mubr.msk.bf16.vlgmr.msra.gmra.mrb[12].mxu0 %vm860_vm11, %v889_v4  ;;  %v1177_v4 = vpack.c.bf16 %v2103_v45, %v2103_v45 }
 0x2ae   : > { %1669 = vmatpush3.bf16.msra.mxu0 %v1042_v2  ;;  %1672 = vmatprep.mubr.msk.bf16.mxu0 %vm1864_vm0, %v1863_v3  ;;  %v1272_v2 = vpack.c.bf16 %v1031_v1, %v1030_v0 }
 0x2af   : > { %1670 = vmatprep.subr.bf16.mxu0 %v1863_v3  ;;  %v1275_v45 = vrot.slane %v1177_v4, 1 }
 0x2b2   : > { %1671 = vmatpush3.bf16.msra.mxu0 %v1043_v9  ;;  %v1273_v9 = vpack.c.bf16 %v1033_v8, %v1032_v5  ;;  %v1416_v5 = vld [vmem:[%s2376_s15 + $0x8] sm:$0xff]  ;;  %v1417_v8 = vld [vmem:[%s2376_s15 + $0x10] sm:$0xff] }
 0x2b3   : > { %1684 = vmatprep.subr.bf16.mxu0 %v1863_v3 }
 0x2b5   : > { %1673 = vmatmul.mubr.msk.bf16.vlgmr.msra.gmra.mrb[16].mxu0 %vm595_vm2, %v1041_v11  ;;  %v1021_v11 = vld [vmem:[%s2373_s12 + $0x58] sm:$0xff] }
 0x2b6   : > { %1688 = vmatprep.mubr.msk.bf16.mxu0 %vm1864_vm0, %v1863_v3  ;;  %1685 = vmatpush3.bf16.msra.mxu0 %v1131_v21  ;;  %v1132_v12 = vpack.c.bf16 %v1021_v11, %v1020_v10  ;;  %v1224_v21 = vpack.c.bf16 %v1027_v15, %v1026_v14  ;;  %v1419_v11 = vld [vmem:[%s2376_s15 + $0x20] sm:$0xff]  ;;  %v1421_v14 = vld [vmem:[%s2376_s15 + $0x30] sm:$0xff]  ;;  %v1422_v15 = vld [vmem:[%s2376_s15 + $0x38] sm:$0xff] }
 0x2b7   : > { %1686 = vmatprep.subr.bf16.mxu0 %v1863_v3 }
 0x2ba   : > { %1687 = vmatpush3.bf16.msra.mxu0 %v1132_v12  ;;  %v1420_v12 = vld [vmem:[%s2376_s15 + $0x28] sm:$0xff] }
 0x2bb   : > { %1700 = vmatprep.subr.bf16.mxu0 %v1863_v3 }
 0x380   : > { %v933_v23 = vpop.f32.mrb[12].mxu0 }
 0x381   : > { %v948_v24 = vmul.f32 %v943_v22, %v933_v23  ;;  %v1658_v25 = vpop.f32.mrb[13].mxu0 }
 0x382   : > { %v936_v28 = vpop.f32.mrb[14].mxu0  ;;  %v1029_v25 = vld [vmem:[%s2373_s12 + $0x98] sm:$0xff] }
 0x383   : > { %v949_v29 = vmul.f32 %v945_v27, %v936_v28  ;;  %v1659_v30 = vpop.f32.mrb[15].mxu0  ;;  %v950_v31 = vsel %vm595_vm2, %v948_v24, 0.0  ;;  %v1028_v24 = vld [vmem:[%s2373_s12 + $0x90] sm:$0xff]  ;;  %v1034_v27 = vld [vmem:[%s2373_s12 + $0xc0] sm:$0xff]  ;;  %v1035_v28 = vld [vmem:[%s2373_s12 + $0xc8] sm:$0xff] }
 0x384   : > { %v1225_v26 = vpack.c.bf16 %v1029_v25, %v1028_v24  ;;  %v1320_v33 = vpack.c.bf16 %v1035_v28, %v1034_v27  ;;  %v1385_v27 = vld [vmem:[%s2375_s14] sm:$0x1] }
 0x385   : > { %v951_v32 = vsel %vm597_vm3, %v949_v29, 0.0  ;;  %vm1428_vm3 = vcmask 523264  }
 0x386   : > { %v952_v34 = vadd.f32 %v951_v32, %v950_v31 }
 0x388   : > { %v953_v36 = vrot.slane %v952_v34, 4  ;;  %v2175_v37 = vpop.f32.mrb[16].mxu0 }
 0x389   : > { %v1674_v38 = vpop.f32.mrb[17].mxu0 }
 0x38a   : > { %v954_v40 = vadd.f32 %v953_v36, %v952_v34  ;;  %v1084_v41 = vpop.f32.mrb[18].mxu0  ;;  %v1226_v34 = vshrl.u32 %v1177_v4, 16  ;;  %v1036_v36 = vld [vmem:[%s2373_s12 + $0xd0] sm:$0xff]  ;;  %v1037_v38 = vld [vmem:[%s2373_s12 + $0xd8] sm:$0xff] }
 0x38b   : > { %v1675_v42 = vpop.f32.mrb[19].mxu0 }
 0x38c   : > { %v955_v43 = vrot.slane %v954_v40, 2  ;;  %v1322_v42 = vrot.slane %v1226_v34, 1 }
 0x38e   : > { %v956_v46 = vadd.f32 %v955_v43, %v954_v40 }
 0x390   : > { %v957_v47 = vrot.slane %v956_v46, 1 }
 0x392   : > { %v958_v50 = vadd.f32 %v957_v47, %v956_v46 }
 0x394   : > { %v959_v52 = vpack.c.bf16 %v958_v50, %v958_v50 }
 0x396   : > { %1665 = vmatmul.mubr.msk.bf16.vlgmr.msra.gmra.mrb[4].mxu1 %vm595_vm2, %v959_v52 }
 0x397   : > { %1677 = vmatpush3.bf16.msra.mxu1 %v1039_v51  ;;  %1680 = vmatprep.mubr.msk.bf16.mxu1 %vm1864_vm0, %v1863_v3 }
 0x398   : > { %1678 = vmatprep.subr.bf16.mxu1 %v1863_v3 }
 0x39b   : > { %1679 = vmatpush3.bf16.msra.mxu1 %v1040_v7 }
 0x39c   : > { %1692 = vmatprep.subr.bf16.mxu1 %v1863_v3 }
 0x39e   : > { %1681 = vmatmul.mubr.msk.bf16.vlgmr.msra.gmra.mrb[8].mxu1 %vm595_vm2, %v1038_v60 }
 0x39f   : > { %1693 = vmatpush3.bf16.msra.mxu1 %v1178_v59  ;;  %1696 = vmatprep.mubr.msk.bf16.mxu1 %vm1864_vm0, %v1863_v3  ;;  %v1367_v59 = vld [vmem:[%s2374_s13] sm:$0x1] }
 0x3a0   : > { %1694 = vmatprep.subr.bf16.mxu1 %v1863_v3 }
 0x3a3   : > { %1695 = vmatpush3.bf16.msra.mxu1 %v1179_v63 }
 0x3a4   : > { %1708 = vmatprep.subr.bf16.mxu1 %v1863_v3 }
 0x3a6   : > { %1697 = vmatmul.mubr.msk.bf16.vlgmr.msra.gmra.mrb[12].mxu1 %vm595_vm2, %v1177_v4  ;;  %v1415_v4 = vld [vmem:[%s2376_s15] sm:$0xff] }
 0x3a7   : > { %1709 = vmatpush3.bf16.msra.mxu1 %v1272_v2  ;;  %1712 = vmatprep.mubr.msk.bf16.mxu1 %vm1864_vm0, %v1863_v3 }
 0x3a8   : > { %1710 = vmatprep.subr.bf16.mxu1 %v1863_v3 }
 0x3ab   : > { %1711 = vmatpush3.bf16.msra.mxu1 %v1273_v9  ;;  %v1423_v9 = vpack.c.bf16 %v1416_v5, %v1415_v4 }
 0x3ac   : > { %1724 = vmatprep.subr.bf16.mxu1 %v1863_v3 }
 0x3ae   : > { %1713 = vmatmul.mubr.msk.bf16.vlgmr.msra.gmra.mrb[16].mxu1 %vm595_vm2, %v1275_v45  ;;  %v1418_v45 = vld [vmem:[%s2376_s15 + $0x18] sm:$0xff] }
 0x3af   : > { %1732 = vmatprep.mubr.msk.bf16.mxu1 %vm1864_vm0, %v1863_v3  ;;  %1725 = vmatpush3.bf16.msra.mxu1 %v1423_v9  ;;  %v1424_v10 = vpack.c.bf16 %v1418_v45, %v1417_v8 }
 0x3b0   : > { %1726 = vmatprep.subr.bf16.mxu1 %v1863_v3 }
 0x3b3   : > { %1727 = vmatpush3.bf16.msra.mxu1 %v1424_v10 }
 0x3b4   : > { %1728 = vmatprep.subr.bf16.mxu1 %v1863_v3 }
 0x469   : > { %v1004_v16 = vpop.f32.mrb[4].mxu1 }
 0x46a   : > { %v1005_v18 = vadd.f32 %v1004_v16, %v966_v13  ;;  %v1666_v19 = vpop.f32.mrb[5].mxu1  ;;  %v1425_v13 = vpack.c.bf16 %v1420_v12, %v1419_v11  ;;  %v1426_v16 = vpack.c.bf16 %v1422_v15, %v1421_v14 }
 0x46b   : > { %v1007_v20 = vpop.f32.mrb[6].mxu1 }
 0x46c   : > { %v1130_v22 = vpack.c.bf16 %v1005_v18, %v1005_v18  ;;  %v1667_v23 = vpop.f32.mrb[7].mxu1  ;;  %1729 = vmatpush3.bf16.msra.mxu1 %v1425_v13 }
 0x46d   : > { %1730 = vmatprep.subr.bf16.mxu1 %v1863_v3 }
 0x46e   : > { %1689 = vmatmul.mubr.msk.bf16.vlgmr.msra.gmra.mrb[20].mxu0 %vm595_vm2, %v1130_v22 }
 0x46f   : > { %1701 = vmatpush3.bf16.msra.mxu0 %v1224_v21  ;;  %1704 = vmatprep.mubr.msk.bf16.mxu0 %vm1864_vm0, %v1863_v3 }
 0x470   : > { %1702 = vmatprep.subr.bf16.mxu0 %v1863_v3  ;;  %1731 = vmatpush3.bf16.msra.mxu1 %v1426_v16 }
 0x471   : > { %v1124_v29 = vpop.f32.mrb[8].mxu1 }
 0x472   : > { %v1125_v30 = vadd.f32 %v1124_v29, %v2175_v37  ;;  %v1682_v31 = vpop.f32.mrb[9].mxu1  ;;  %v1321_v37 = vpack.c.bf16 %v1037_v38, %v1036_v36 }
 0x473   : > { %v1127_v32 = vpop.f32.mrb[10].mxu1  ;;  %1703 = vmatpush3.bf16.msra.mxu0 %v1225_v26 }
 0x474   : > { %v1683_v35 = vpop.f32.mrb[11].mxu1  ;;  %1716 = vmatprep.subr.bf16.mxu0 %v1863_v3 }
 0x476   : > { %1705 = vmatmul.mubr.msk.bf16.vlgmr.msra.gmra.mrb[24].mxu0 %vm595_vm2, %v1226_v34 }
 0x477   : > { %1717 = vmatpush3.bf16.msra.mxu0 %v1320_v33  ;;  %1720 = vmatprep.mubr.msk.bf16.mxu0 %vm1864_vm0, %v1863_v3 }
 0x478   : > { %1718 = vmatprep.subr.bf16.mxu0 %v1863_v3 }
 0x479   : > { %v1217_v39 = vpop.f32.mrb[12].mxu1 }
 0x47a   : > { %v1698_v40 = vpop.f32.mrb[13].mxu1 }
 0x47b   : > { %v1220_v41 = vpop.f32.mrb[14].mxu1  ;;  %1719 = vmatpush3.bf16.msra.mxu0 %v1321_v37 }
 0x47c   : > { %v1699_v43 = vpop.f32.mrb[15].mxu1 }
 0x47e   : > { %1721 = vmatmul.mubr.msk.bf16.vlgmr.msra.gmra.mrb[28].mxu0 %vm595_vm2, %v1322_v42 }
 0x481   : > { %v1313_v44 = vpop.f32.mrb[16].mxu1 }
 0x482   : > { %v1714_v46 = vpop.f32.mrb[17].mxu1 }
 0x483   : > { %v1316_v47 = vpop.f32.mrb[18].mxu1 }
 0x484   : > { %v1715_v48 = vpop.f32.mrb[19].mxu1 }
 0x541   : > { %v1170_v17 = vpop.f32.mrb[20].mxu0 }
 0x542   : > { %v1176_v49 = vadd.f32 %v1170_v17, %v1125_v30  ;;  %v1690_v50 = vpop.f32.mrb[21].mxu0 }
 0x543   : > { %v1173_v51 = vpop.f32.mrb[22].mxu0 }
 0x544   : > { %v1691_v52 = vpop.f32.mrb[23].mxu0  ;;  %v1223_v53 = vadd.f32 %v1217_v39, %v1176_v49  ;;  %v1866_v49 = vmov -1.0  }
 0x549   : > { %v1265_v6 = vpop.f32.mrb[24].mxu0 }
 0x54a   : > { %v1271_v54 = vadd.f32 %v1265_v6, %v1223_v53  ;;  %v1706_v55 = vpop.f32.mrb[25].mxu0 }
 0x54b   : > { %v1268_v7 = vpop.f32.mrb[26].mxu0  ;;  %v1427_v55 = vld [vmem:[%s2377_s16] sm:$0x1] }
 0x54c   : > { %v1707_v56 = vpop.f32.mrb[27].mxu0  ;;  %v1319_v57 = vadd.f32 %v1313_v44, %v1271_v54 }
 0x551   : > { %v1360_v58 = vpop.f32.mrb[28].mxu0 }
 0x552   : > { %v1366_v60 = vadd.f32 %v1360_v58, %v1319_v57  ;;  %v1722_v61 = vpop.f32.mrb[29].mxu0 }
 0x553   : > { %v1363_v62 = vpop.f32.mrb[30].mxu0 }
 0x554   : > { %v1368_v63 = vadd.f32 %v1367_v59, %v1366_v60  ;;  %v1723_v0 = vpop.f32.mrb[31].mxu0 }
 0x556   : > { %v1369_v1 = vmul.f32 %v1368_v63, %v1368_v63 }
 0x558   : > { %v1371_v2 = vsel %vm1370_vm15, %v1369_v1, 0.0 }
 0x559   : > { %1372 = vadd.xlane.f32.xlu1 %v1371_v2 }
 0x5e6   : > { %v1373_v18 = vpop.xlane.xlu1 %1372 }
 0x5e7   : > { %1790 = vrsqrt.f32 %v1373_v18  ;;  %vm1376_vm0 = vcmp.eq.f32.partialorder %v1373_v18, inf  ;;  %v1379_v21 = vand.u32 2147483648, %v1373_v18  ;;  %vm1378_vm1 = vcmp.eq.f32.partialorder %v1373_v18, 0.0 }
 0x5f1   : > { %v1791_v19 = vpop.eup %1790 }
 0x5f2   : > { %v1375_v20 = vmul.f32 %v1791_v19, %v1373_v18 }
 0x5f4   : > { %v1377_v22 = vsel %vm1376_vm0, %v1373_v18, %v1375_v20 }
 0x5f5   : > { %v1380_v23 = vsel %vm1378_vm1, %v1379_v21, %v1377_v22 }
 0x5f6   : > { %v1381_v24 = vmul.f32 0.125, %v1380_v23 }
 0x5f8   : > { %v1382_v25 = vadd.f32 1e-06, %v1381_v24 }
 0x5fa   : > { %1792 = vrcp.f32 %v1382_v25 }
 0x604   : > { %v1793_v26 = vpop.eup %1792 }
 0x605   : > { %v1384_v28 = vmul.f32 %v1793_v26, %v1368_v63 }
 0x607   : > { %v1386_v3 = vmul.f32 %v1385_v27, %v1384_v28 }
 0x609   : > { %v1388_v29 = vmul.f32 0.70710677, %v1386_v3  ;;  %v1387_v52 = vmul.f32 0.5, %v1386_v3 }
 0x60b   : > { %v1391_v30 = vand.u32 2147483647, %v1388_v29  ;;  %vm1389_vm2 = vcmp.ge.f32.partialorder %v1388_v29, 0.0 }
 0x60c   : > { %v1390_v50 = vsel %vm1389_vm2, 1.0, %v1866_v49 }
 0x60d   : > { %v1392_v31 = vmul.f32 0.3275911, %v1391_v30  ;;  %v1405_v33 = vsub.f32 0.0, %v1391_v30 }
 0x60f   : > { %v1393_v32 = vadd.f32 1.0, %v1392_v31  ;;  %v1406_v35 = vmul.f32 %v1405_v33, %v1391_v30 }
 0x611   : > { %1794 = vrcp.f32 %v1393_v32  ;;  %v1407_v37 = vmul.f32 1.442695, %v1406_v35 }
 0x613   : > { %1796 = vpow2.f32 %v1407_v37 }
 0x61b   : > { %v1795_v34 = vpop.eup %1794 }
 0x61c   : > { %v1396_v36 = vmul.f32 1.0614054, %v1795_v34 }
 0x61d   : > { %v1797_v47 = vpop.eup %1796 }
 0x61e   : > { %v1397_v38 = vadd.f32 -1.4531521, %v1396_v36 }
 0x620   : > { %v1398_v39 = vmul.f32 %v1795_v34, %v1397_v38 }
 0x622   : > { %v1399_v40 = vadd.f32 1.4214138, %v1398_v39 }
 0x624   : > { %v1400_v41 = vmul.f32 %v1795_v34, %v1399_v40 }
 0x626   : > { %v1401_v42 = vadd.f32 -0.28449672, %v1400_v41 }
 0x628   : > { %v1402_v43 = vmul.f32 %v1795_v34, %v1401_v42 }
 0x62a   : > { %v1403_v44 = vadd.f32 0.2548296, %v1402_v43 }
 0x62c   : > { %v1404_v46 = vmul.f32 %v1795_v34, %v1403_v44 }
 0x62e   : > { %v1409_v48 = vmul.f32 %v1797_v47, %v1404_v46 }
 0x630   : > { %v1410_v17 = vsub.f32 1.0, %v1409_v48 }
 0x632   : > { %v1411_v51 = vmul.f32 %v1410_v17, %v1390_v50 }
 0x634   : > { %v1412_v53 = vadd.f32 1.0, %v1411_v51 }
 0x636   : > { %v1413_v6 = vmul.f32 %v1412_v53, %v1387_v52 }
 0x638   : > { %v1414_v54 = vpack.c.bf16 %v1413_v6, %v1413_v6 }
 0x63a   : > { %1733 = vmatmul.mubr.msk.bf16.vlgmr.msra.gmra.mrb[20].mxu1 %vm1428_vm3, %v1414_v54 }
 0x70d   : > { %v1466_v7 = vpop.f32.mrb[20].mxu1 }
 0x70e   : > { %v1467_v56 = vadd.f32 %v1466_v7, %v1427_v55  ;;  %v1734_v57 = vpop.f32.mrb[21].mxu1 }
 0x70f   : > { %v1469_v58 = vpop.f32.mrb[22].mxu1 }
 0x710   : > { %v1735_v59 = vpop.f32.mrb[23].mxu1  ;;  %1473 = vst.msk [vmem:[%s555_s23] sm:$0x1] %vm1472_vm4, %v1467_v56 }
 0x711   : > { %1811 = shalt.err (!%p1808_p3)
}
 0x712   : > { %s1812_s22 = scalar_lea.hbm %s2319_s30, 16  ;;  %s1816_s19 = scalar_lea.hbm %s2378_s17, 32 }
 0x713   : > { %p1813_p4 = scmp.ne.s32.totalorder %s2319_s30, %s1812_s22  ;;  %p1817_p9 = scmp.lt.u32.totalorder %s2319_s30, %s2378_s17 }
 0x714   : > { %p1818_p10 = scmp.lt.u32.totalorder %s1816_s19, %s1812_s22  ;;  %p1820_p12 = scmp.lt.u32.totalorder %s1812_s22, %s2319_s30 }
 0x715   : > { %p1814_p7 = pnand %p1813_p4, %p1996_p5 }
 0x716   : > { %p1819_p11 = por %p1818_p10, %p1817_p9 }
 0x717   : > { %p1815_p8 = pneg %p1814_p7 }
 0x718   : > { %p1821_p13 = por %p1820_p12, %p1819_p11 }
 0x71a   : > { %p1822_p0 = pnand %p1821_p13, %p1815_p8 }
 0x71c   : > { %1825 = shalt.err (!%p1822_p0)
}
 0x71d   : > { %1736 = dma.vmem_to_hbm [thread:$0]  (%p1996_p5), %s2321_s11, 16, %s2319_s30, %s1475_s28  }
 0x71e PF: > { %p1742_p1 = scmp.ge.s32.totalorder %s1860_s27, 2  ;;  %s1499_s18 = sand.u32 1, %s1848_s24  }
 0x71f   : > { %s1500_s29 = scalar_lea.sflag [#allocation3], %s1499_s18 }
 0x720   : > { %p1739_p2 = pnand %p1742_p1, %p2000_p6 }
 0x722   : > { %1843 = dma.done.wait (!%p1739_p2), %s1500_s29, 16  }
 0x723   : > { %1845 = vsyncadd (!%p1739_p2), %s1500_s29, 4294967280  ;;  %s2392_s22 = sld [smem:[#allocation5_spill]]  ;;  %p27_p3 = scmp.ge.s32.totalorder %s1983_s0, 4  }
 0x724   : > { %s2393_s24 = smov %s1852_s25  ;;  %s2394_s25 = smov %s1856_s26 }
 0x725   : > { %s2396_s27 = smov %s1983_s0  ;;  %29 = sbr.rel (!%p27_p3) target bundleno = 9 (0x9), region = 126 }
 0x729   : > { %s2395_s26 = smov %s2392_s22 }
 0x72c   :  { %1504 = vsyncpa [#allocation3], 1 }
 0x72d   :  { %1506 = vsyncpa [#allocation3 + $0x1], 1 }

</bundles_post_ra>
